<compile_context>
chip_gen: v5e
topology: v5e:2x2
jax: 0.10.0
libtpu: 0.0.40
codegen_flags: <defaults>
</compile_context>

<pallas_src>
import functools
import math

import numpy as np
import jax
import jax.numpy as jnp
from jax.experimental import pallas as pl
from jax.experimental.pallas import tpu as pltpu

# ----- small, module-consistent config -----
BATCH = 2
SEQ = 8                 # args.max_seq_length (== actual seq_len)
HIDDEN = 32             # args.hidden_size
INTER = 4 * HIDDEN      # FeedForward inner size
NUM_LAYERS = 2          # args.num_hidden_layers
NFREQ = SEQ // 2 + 1    # rfft bins
NFREQ_PAD = 8           # pad freq axis to a sublane multiple (padded rows are zero)
LN_EPS = 1e-12
_HIGHEST = jax.lax.Precision.HIGHEST
# args.hidden_dropout_prob: dropout is identity in eval mode (no-op here).


# ----------------- in-kernel math helpers -----------------
def _gelu(x):
    # erf-based GELU (torch ACT2FN['gelu']); Abramowitz & Stegun 7.1.26 with the
    # 1/sqrt(2) folded into the constants.  exp() lowers to the TPU EUP.
    a1, a2, a3, a4, a5 = 0.254829592, -0.284496736, 1.421413741, -1.453152027, 1.061405429
    p = 0.3275911 * 0.7071067811865476
    s = jnp.where(x >= 0.0, 1.0, -1.0)
    ax = jnp.abs(x)
    t = 1.0 / (1.0 + p * ax)
    poly = ((((a5 * t + a4) * t + a3) * t + a2) * t + a1) * t
    erf_val = s * (1.0 - poly * jnp.exp(-0.5 * ax * ax))
    return 0.5 * x * (1.0 + erf_val)


def _layer_norm(x, gamma, beta):
    # BERT-style LayerNorm, eps=1e-12; rsqrt -> EUP slot instead of VALU divide+sqrt.
    u = jnp.mean(x, axis=-1, keepdims=True)
    s = jnp.mean((x - u) ** 2, axis=-1, keepdims=True)
    return (x - u) * jax.lax.rsqrt(s + LN_EPS) * gamma + beta


# ----------------- the Pallas kernel -----------------
def fmlprec_encoder_kernel(x_ref, c_ref, a_ref, slab_ref, w1b_ref, w2b_ref, out_ref,
                           *, num_layers, batch, fp, hidden, inter):
    h = x_ref[...]          # (B*L, H)        running hidden state (value-carried)
    c = c_ref[...]          # (2*B*Fp, B*L)   stacked [cos; -sin], block-diag over batch
    a = a_ref[...]          # (B*L, 2*B*Fp)   stacked [ar | ai],  block-diag over batch
    half = batch * fp       # rows per (real|imag) half of the stacked spectrum

    for layer in range(num_layers):             # static unroll: no grid, no pl.when
        # ---- static per-layer slices of the packed parameter slabs (free views) ----
        wr   = slab_ref[layer, 0:fp, :]                      # (Fp, H)   filter real
        wi   = slab_ref[layer, fp:2 * fp, :]                 # (Fp, H)   filter imag
        ln1w = slab_ref[layer, 2 * fp + 0:2 * fp + 1, :]     # (1, H)
        ln1b = slab_ref[layer, 2 * fp + 1:2 * fp + 2, :]
        ln2w = slab_ref[layer, 2 * fp + 2:2 * fp + 3, :]
        ln2b = slab_ref[layer, 2 * fp + 3:2 * fp + 4, :]
        w1   = w1b_ref[layer, 0:hidden, :]                   # (H, 4H)
        b1   = w1b_ref[layer, hidden:hidden + 1, :]          # (1, 4H)
        w2   = w2b_ref[layer, 0:inter, :]                    # (4H, H)
        b2   = w2b_ref[layer, inter:inter + 1, :]            # (1, H)

        # replicate the (Fp, H) filter over the 2*B stacked batch blocks, once per
        # layer, entirely in VMEM (shipped unreplicated from HBM).
        p = jnp.concatenate([wr] * (2 * batch), axis=0)                      # (2*B*Fp, H)
        q = jnp.concatenate([-wi] * batch + [wi] * batch, axis=0)            # (2*B*Fp, H)

        # ---- FMLPRecLayer: rfft -> complex filter -> irfft as 2 real matmuls ----
        x_f = jnp.dot(c, h, preferred_element_type=jnp.float32,
                      precision=_HIGHEST)                                    # [xr ; xi]
        x_s = pltpu.roll(x_f, shift=half, axis=0)                            # [xi ; xr] (XLU)
        y_f = x_f * p + x_s * q                                              # [yr ; yi]
        filt = jnp.dot(a, y_f, preferred_element_type=jnp.float32,
                       precision=_HIGHEST)                                   # (B*L, H)
        h1 = _layer_norm(filt + h, ln1w, ln1b)                               # dropout = id

        # ---- FeedForward batched over all B*L rows ----
        act = _gelu(jnp.dot(h1, w1, preferred_element_type=jnp.float32,
                            precision=_HIGHEST) + b1)
        ff = jnp.dot(act, w2, preferred_element_type=jnp.float32,
                     precision=_HIGHEST) + b2
        h = _layer_norm(ff + h1, ln2w, ln2b)

    out_ref[...] = h        # single store


# ----------------- host-side glue -----------------
def _dft_matrices_np(L, F, F_pad, B):
    """Stacked, batch-block-diagonal real matrices for rfft / irfft (norm='ortho').

    Pure numpy -> evaluated at trace time and baked into the jaxpr as constants.
    """
    t = np.arange(L)[None, :]
    f = np.arange(F)[:, None]
    ang = 2.0 * np.pi * f * t / L
    scale = 1.0 / np.sqrt(L)
    cr = np.cos(ang) * scale                 # (F, L)  forward real
    ci = -np.sin(ang) * scale                # (F, L)  forward imag
    # irfft coefficients: DC counted once, Nyquist (even L) once, others twice;
    # imaginary parts at DC / Nyquist drop out (sin term is identically zero there).
    coef = np.full((F, 1), 2.0)
    coef[0, 0] = 1.0
    if L % 2 == 0:
        coef[-1, 0] = 1.0
    ar = (np.cos(ang) * coef * scale).T      # (L, F)
    ai = (-np.sin(ang) * coef * scale).T     # (L, F)

    crp = np.pad(cr, ((0, F_pad - F), (0, 0)))
    cip = np.pad(ci, ((0, F_pad - F), (0, 0)))
    arp = np.pad(ar, ((0, 0), (0, F_pad - F)))
    aip = np.pad(ai, ((0, 0), (0, F_pad - F)))

    def blkdiag(m):
        r, c = m.shape
        out = np.zeros((B * r, B * c), m.dtype)
        for b in range(B):
            out[b * r:(b + 1) * r, b * c:(b + 1) * c] = m
        return out

    c_big = np.concatenate([blkdiag(crp), blkdiag(cip)], axis=0)   # (2*B*Fp, B*L)
    a_big = np.concatenate([blkdiag(arp), blkdiag(aip)], axis=1)   # (B*L, 2*B*Fp)
    return c_big.astype(np.float32), a_big.astype(np.float32)


def pack_params(params):
    """Pack the 13 tiny per-layer parameter arrays into 3 contiguous slabs.

    Do this ONCE per parameter set (not per forward call): fewer, larger DMAs.
      slab : (L, 2*Fp + 4, H)   = [w_r | w_i | ln1w | ln1b | ln2w | ln2b]
      w1b  : (L, H + 1, 4H)     = [w1 ; b1]
      w2b  : (L, 4H + 1, H)     = [w2 ; b2]
    """
    cw = params["cw"]
    pad_f = NFREQ_PAD - NFREQ
    wr = jnp.pad(cw[..., 0], ((0, 0), (0, pad_f), (0, 0)))          # (L, Fp, H)
    wi = jnp.pad(cw[..., 1], ((0, 0), (0, pad_f), (0, 0)))
    slab = jnp.concatenate(
        [wr, wi, params["ln1w"], params["ln1b"], params["ln2w"], params["ln2b"]], axis=1)
    w1b = jnp.concatenate([params["w1"], params["b1"]], axis=1)
    w2b = jnp.concatenate([params["w2"], params["b2"]], axis=1)
    return slab, w1b, w2b


@jax.jit
def fmlprec_forward(x, slab, w1b, w2b):
    """Jitted forward: reshape -> single pallas_call -> reshape."""
    B, L, H = x.shape
    num_layers, _, inter = w1b.shape
    inter = inter  # 4H
    c_np, a_np = _dft_matrices_np(L, NFREQ, NFREQ_PAD, B)   # trace-time constants
    c_big = jnp.asarray(c_np)
    a_big = jnp.asarray(a_np)
    x_flat = x.reshape(B * L, H)          # free row-major reshape; batch folded into rows

    vmem_spec = pl.BlockSpec(memory_space=pltpu.MemorySpace.VMEM)
    kernel = functools.partial(
        fmlprec_encoder_kernel,
        num_layers=num_layers, batch=B, fp=NFREQ_PAD, hidden=H, inter=inter)

    out = pl.pallas_call(
        kernel,
        out_shape=jax.ShapeDtypeStruct((B * L, H), jnp.float32),
        in_specs=[vmem_spec] * 6,
        out_specs=vmem_spec,
    )(x_flat, c_big, a_big, slab, w1b, w2b)
    return out.reshape(B, L, H)


def fmlprec_encoder(x, params):
    """Returns [input_hidden_states, final_hidden_states] (output_all_encoded_layers=False)."""
    slab, w1b, w2b = pack_params(params)
    return [x, fmlprec_forward(x, slab, w1b, w2b)]


def make_params(key):
    ks = jax.random.split(key, 9)
    std = 0.02  # FMLPRec initializer_range
    return dict(
        cw=jax.random.normal(ks[0], (NUM_LAYERS, NFREQ, HIDDEN, 2), jnp.float32) * std,
        w1=jax.random.normal(ks[1], (NUM_LAYERS, HIDDEN, INTER), jnp.float32) * std,
        b1=jax.random.normal(ks[2], (NUM_LAYERS, 1, INTER), jnp.float32) * std,
        w2=jax.random.normal(ks[3], (NUM_LAYERS, INTER, HIDDEN), jnp.float32) * std,
        b2=jax.random.normal(ks[4], (NUM_LAYERS, 1, HIDDEN), jnp.float32) * std,
        ln1w=1.0 + jax.random.normal(ks[5], (NUM_LAYERS, 1, HIDDEN), jnp.float32) * std,
        ln1b=jax.random.normal(ks[6], (NUM_LAYERS, 1, HIDDEN), jnp.float32) * std,
        ln2w=1.0 + jax.random.normal(ks[7], (NUM_LAYERS, 1, HIDDEN), jnp.float32) * std,
        ln2b=jax.random.normal(ks[8], (NUM_LAYERS, 1, HIDDEN), jnp.float32) * std,
    )


# ----------------- pure numpy reference (torch-faithful, float64) -----------------
def reference_forward(x, params):
    erf = np.vectorize(math.erf)

    def ln(v, g, b):
        u = v.mean(-1, keepdims=True)
        s = ((v - u) ** 2).mean(-1, keepdims=True)
        return (v - u) / np.sqrt(s + LN_EPS) * g + b

    h = np.asarray(x, np.float64)
    cw = np.asarray(params["cw"], np.float64)
    for i in range(NUM_LAYERS):
        X = np.fft.rfft(h, axis=1, norm="ortho")
        w = cw[i, :, :, 0] + 1j * cw[i, :, :, 1]
        filt = np.fft.irfft(X * w[None], n=SEQ, axis=1, norm="ortho")
        h1 = ln(filt + h, np.asarray(params["ln1w"][i, 0], np.float64),
                np.asarray(params["ln1b"][i, 0], np.float64))
        pre = h1 @ np.asarray(params["w1"][i], np.float64) + np.asarray(params["b1"][i, 0], np.float64)
        inter = 0.5 * pre * (1.0 + erf(pre / math.sqrt(2.0)))
        ff = inter @ np.asarray(params["w2"][i], np.float64) + np.asarray(params["b2"][i, 0], np.float64)
        h = ln(ff + h1, np.asarray(params["ln2w"][i, 0], np.float64),
               np.asarray(params["ln2b"][i, 0], np.float64))
    return h


if __name__ == "__main__":
    key = jax.random.PRNGKey(0)
    kx, kp = jax.random.split(key)
    x = jax.random.normal(kx, (BATCH, SEQ, HIDDEN), jnp.float32)
    params = make_params(kp)

    # Pack parameters once (host-side); per-call path is just the jitted pallas_call.
    slab, w1b, w2b = pack_params(params)
    layers = [x, fmlprec_forward(x, slab, w1b, w2b)]
    out = jax.block_until_ready(layers[-1])

    ref = reference_forward(np.asarray(x), params)
    np.testing.assert_allclose(np.asarray(out), ref, rtol=2e-3, atol=2e-3)
    print("KERNEL_OK")
</pallas_src>

<mosaic_0001>
module attributes {stable_mosaic.version = 11 : i64} {
  func.func @fmlprec_encoder_kernel(%arg0: memref<16x32xf32, #tpu.memory_space<vmem>>, %arg1: memref<32x16xf32, #tpu.memory_space<vmem>>, %arg2: memref<16x32xf32, #tpu.memory_space<vmem>>, %arg3: memref<2x20x32xf32, #tpu.memory_space<vmem>>, %arg4: memref<2x33x128xf32, #tpu.memory_space<vmem>>, %arg5: memref<2x129x32xf32, #tpu.memory_space<vmem>>, %arg6: memref<16x32xf32, #tpu.memory_space<vmem>>) attributes {dimension_semantics = [], scalar_prefetch = 0 : i64, scratch_operands = 0 : i64, tpu.core_type = #tpu.core_type<tc>} {
    %c0 = arith.constant 0 : index
    %c0_0 = arith.constant 0 : index
    %0 = vector.load %arg0[%c0, %c0_0] : memref<16x32xf32, #tpu.memory_space<vmem>>, vector<16x32xf32>
    %c0_1 = arith.constant 0 : index
    %c0_2 = arith.constant 0 : index
    %1 = vector.load %arg1[%c0_1, %c0_2] : memref<32x16xf32, #tpu.memory_space<vmem>>, vector<32x16xf32>
    %c0_3 = arith.constant 0 : index
    %c0_4 = arith.constant 0 : index
    %2 = vector.load %arg2[%c0_3, %c0_4] : memref<16x32xf32, #tpu.memory_space<vmem>>, vector<16x32xf32>
    %c0_5 = arith.constant 0 : index
    %c0_6 = arith.constant 0 : index
    %c0_7 = arith.constant 0 : index
    %3 = vector.load %arg3[%c0_5, %c0_6, %c0_7] : memref<2x20x32xf32, #tpu.memory_space<vmem>>, vector<1x8x32xf32>
    %4 = vector.shape_cast %3 : vector<1x8x32xf32> to vector<8x32xf32>
    %c0_8 = arith.constant 0 : index
    %c8 = arith.constant 8 : index
    %c0_9 = arith.constant 0 : index
    %5 = vector.load %arg3[%c0_8, %c8, %c0_9] : memref<2x20x32xf32, #tpu.memory_space<vmem>>, vector<1x8x32xf32>
    %6 = vector.shape_cast %5 : vector<1x8x32xf32> to vector<8x32xf32>
    %c0_10 = arith.constant 0 : index
    %c16 = arith.constant 16 : index
    %c0_11 = arith.constant 0 : index
    %7 = vector.load %arg3[%c0_10, %c16, %c0_11] : memref<2x20x32xf32, #tpu.memory_space<vmem>>, vector<1x1x32xf32>
    %8 = vector.shape_cast %7 : vector<1x1x32xf32> to vector<1x32xf32>
    %c0_12 = arith.constant 0 : index
    %c17 = arith.constant 17 : index
    %c0_13 = arith.constant 0 : index
    %9 = vector.load %arg3[%c0_12, %c17, %c0_13] : memref<2x20x32xf32, #tpu.memory_space<vmem>>, vector<1x1x32xf32>
    %10 = vector.shape_cast %9 : vector<1x1x32xf32> to vector<1x32xf32>
    %c0_14 = arith.constant 0 : index
    %c18 = arith.constant 18 : index
    %c0_15 = arith.constant 0 : index
    %11 = vector.load %arg3[%c0_14, %c18, %c0_15] : memref<2x20x32xf32, #tpu.memory_space<vmem>>, vector<1x1x32xf32>
    %12 = vector.shape_cast %11 : vector<1x1x32xf32> to vector<1x32xf32>
    %c0_16 = arith.constant 0 : index
    %c19 = arith.constant 19 : index
    %c0_17 = arith.constant 0 : index
    %13 = vector.load %arg3[%c0_16, %c19, %c0_17] : memref<2x20x32xf32, #tpu.memory_space<vmem>>, vector<1x1x32xf32>
    %14 = vector.shape_cast %13 : vector<1x1x32xf32> to vector<1x32xf32>
    %c0_18 = arith.constant 0 : index
    %c0_19 = arith.constant 0 : index
    %c0_20 = arith.constant 0 : index
    %15 = vector.load %arg4[%c0_18, %c0_19, %c0_20] : memref<2x33x128xf32, #tpu.memory_space<vmem>>, vector<1x32x128xf32>
    %16 = vector.shape_cast %15 : vector<1x32x128xf32> to vector<32x128xf32>
    %c0_21 = arith.constant 0 : index
    %c32 = arith.constant 32 : index
    %c0_22 = arith.constant 0 : index
    %17 = vector.load %arg4[%c0_21, %c32, %c0_22] : memref<2x33x128xf32, #tpu.memory_space<vmem>>, vector<1x1x128xf32>
    %18 = vector.shape_cast %17 : vector<1x1x128xf32> to vector<1x128xf32>
    %c0_23 = arith.constant 0 : index
    %c0_24 = arith.constant 0 : index
    %c0_25 = arith.constant 0 : index
    %19 = vector.load %arg5[%c0_23, %c0_24, %c0_25] : memref<2x129x32xf32, #tpu.memory_space<vmem>>, vector<1x128x32xf32>
    %20 = vector.shape_cast %19 : vector<1x128x32xf32> to vector<128x32xf32>
    %c0_26 = arith.constant 0 : index
    %c128 = arith.constant 128 : index
    %c0_27 = arith.constant 0 : index
    %21 = vector.load %arg5[%c0_26, %c128, %c0_27] : memref<2x129x32xf32, #tpu.memory_space<vmem>>, vector<1x1x32xf32>
    %22 = vector.shape_cast %21 : vector<1x1x32xf32> to vector<1x32xf32>
    %23 = tpu.concatenate %4, %4, %4, %4 in 0 : vector<8x32xf32>, vector<8x32xf32>, vector<8x32xf32>, vector<8x32xf32> -> vector<32x32xf32>
    %cst = arith.constant 0.000000e+00 : f32
    %24 = vector.broadcast %cst : f32 to vector<8x32xf32>
    %25 = arith.subf %24, %6 : vector<8x32xf32>
    %26 = tpu.concatenate %25, %25, %6, %6 in 0 : vector<8x32xf32>, vector<8x32xf32>, vector<8x32xf32>, vector<8x32xf32> -> vector<32x32xf32>
    %cst_28 = arith.constant dense<0.000000e+00> : vector<32x32xf32>
    %27 = tpu.matmul %1, %0, %cst_28 {dimension_numbers = #tpu.dot_dimension_numbers<[1], [0], [0], [1], [0, 0, 1, 1], [], []>, precision = #tpu.contract_precision<fp32>} : vector<32x16xf32>, vector<16x32xf32>, vector<32x32xf32> -> vector<32x32xf32>
    %c16_i32 = arith.constant 16 : i32
    %28 = tpu.dynamic_rotate %27 by %c16_i32 dim 0 : vector<32x32xf32>, i32 -> vector<32x32xf32>
    %29 = arith.mulf %27, %23 : vector<32x32xf32>
    %30 = arith.mulf %28, %26 : vector<32x32xf32>
    %31 = arith.addf %29, %30 : vector<32x32xf32>
    %cst_29 = arith.constant dense<0.000000e+00> : vector<16x32xf32>
    %32 = tpu.matmul %2, %31, %cst_29 {dimension_numbers = #tpu.dot_dimension_numbers<[1], [0], [0], [1], [0, 0, 1, 1], [], []>, precision = #tpu.contract_precision<fp32>} : vector<16x32xf32>, vector<32x32xf32>, vector<16x32xf32> -> vector<16x32xf32>
    %33 = arith.addf %32, %0 : vector<16x32xf32>
    %cst_30 = arith.constant dense<0.000000e+00> : vector<16xf32>
    %34 = vector.multi_reduction <add>, %33, %cst_30 [1] : vector<16x32xf32> to vector<16xf32>
    %35 = vector.shape_cast %34 : vector<16xf32> to vector<16x1xf32>
    %cst_31 = arith.constant 3.200000e+01 : f32
    %36 = vector.broadcast %cst_31 : f32 to vector<16x1xf32>
    %37 = arith.divf %35, %36 : vector<16x1xf32>
    %38 = vector.broadcast %37 : vector<16x1xf32> to vector<16x32xf32>
    %39 = arith.subf %33, %38 : vector<16x32xf32>
    %40 = arith.mulf %39, %39 : vector<16x32xf32>
    %cst_32 = arith.constant dense<0.000000e+00> : vector<16xf32>
    %41 = vector.multi_reduction <add>, %40, %cst_32 [1] : vector<16x32xf32> to vector<16xf32>
    %42 = vector.shape_cast %41 : vector<16xf32> to vector<16x1xf32>
    %cst_33 = arith.constant 3.200000e+01 : f32
    %43 = vector.broadcast %cst_33 : f32 to vector<16x1xf32>
    %44 = arith.divf %42, %43 : vector<16x1xf32>
    %45 = vector.broadcast %37 : vector<16x1xf32> to vector<16x32xf32>
    %46 = arith.subf %33, %45 : vector<16x32xf32>
    %cst_34 = arith.constant 9.99999996E-13 : f32
    %47 = vector.broadcast %cst_34 : f32 to vector<16x1xf32>
    %48 = arith.addf %44, %47 : vector<16x1xf32>
    %49 = math.rsqrt %48 : vector<16x1xf32>
    %50 = vector.broadcast %49 : vector<16x1xf32> to vector<16x32xf32>
    %51 = arith.mulf %46, %50 : vector<16x32xf32>
    %52 = vector.broadcast %8 : vector<1x32xf32> to vector<16x32xf32>
    %53 = arith.mulf %51, %52 : vector<16x32xf32>
    %54 = vector.broadcast %10 : vector<1x32xf32> to vector<16x32xf32>
    %55 = arith.addf %53, %54 : vector<16x32xf32>
    %cst_35 = arith.constant dense<0.000000e+00> : vector<16x128xf32>
    %56 = tpu.matmul %55, %16, %cst_35 {dimension_numbers = #tpu.dot_dimension_numbers<[1], [0], [0], [1], [0, 0, 1, 1], [], []>, precision = #tpu.contract_precision<fp32>} : vector<16x32xf32>, vector<32x128xf32>, vector<16x128xf32> -> vector<16x128xf32>
    %57 = vector.broadcast %18 : vector<1x128xf32> to vector<16x128xf32>
    %58 = arith.addf %56, %57 : vector<16x128xf32>
    %cst_36 = arith.constant 0.000000e+00 : f32
    %59 = vector.broadcast %cst_36 : f32 to vector<16x128xf32>
    %60 = arith.cmpf oge, %58, %59 : vector<16x128xf32>
    %cst_37 = arith.constant 1.000000e+00 : f32
    %cst_38 = arith.constant -1.000000e+00 : f32
    %61 = vector.broadcast %cst_37 : f32 to vector<16x128xf32>
    %62 = vector.broadcast %cst_38 : f32 to vector<16x128xf32>
    %63 = arith.select %60, %61, %62 : vector<16x128xi1>, vector<16x128xf32>
    %64 = math.absf %58 : vector<16x128xf32>
    %cst_39 = arith.constant 0.231641889 : f32
    %65 = vector.broadcast %cst_39 : f32 to vector<16x128xf32>
    %66 = arith.mulf %65, %64 : vector<16x128xf32>
    %cst_40 = arith.constant 1.000000e+00 : f32
    %67 = vector.broadcast %cst_40 : f32 to vector<16x128xf32>
    %68 = arith.addf %67, %66 : vector<16x128xf32>
    %cst_41 = arith.constant 1.000000e+00 : f32
    %69 = vector.broadcast %cst_41 : f32 to vector<16x128xf32>
    %70 = arith.divf %69, %68 : vector<16x128xf32>
    %cst_42 = arith.constant 1.06140542 : f32
    %71 = vector.broadcast %cst_42 : f32 to vector<16x128xf32>
    %72 = arith.mulf %71, %70 : vector<16x128xf32>
    %cst_43 = arith.constant -1.45315206 : f32
    %73 = vector.broadcast %cst_43 : f32 to vector<16x128xf32>
    %74 = arith.addf %72, %73 : vector<16x128xf32>
    %75 = arith.mulf %74, %70 : vector<16x128xf32>
    %cst_44 = arith.constant 1.42141378 : f32
    %76 = vector.broadcast %cst_44 : f32 to vector<16x128xf32>
    %77 = arith.addf %75, %76 : vector<16x128xf32>
    %78 = arith.mulf %77, %70 : vector<16x128xf32>
    %cst_45 = arith.constant -0.284496725 : f32
    %79 = vector.broadcast %cst_45 : f32 to vector<16x128xf32>
    %80 = arith.addf %78, %79 : vector<16x128xf32>
    %81 = arith.mulf %80, %70 : vector<16x128xf32>
    %cst_46 = arith.constant 0.254829586 : f32
    %82 = vector.broadcast %cst_46 : f32 to vector<16x128xf32>
    %83 = arith.addf %81, %82 : vector<16x128xf32>
    %84 = arith.mulf %83, %70 : vector<16x128xf32>
    %cst_47 = arith.constant -5.000000e-01 : f32
    %85 = vector.broadcast %cst_47 : f32 to vector<16x128xf32>
    %86 = arith.mulf %85, %64 : vector<16x128xf32>
    %87 = arith.mulf %86, %64 : vector<16x128xf32>
    %88 = math.exp %87 : vector<16x128xf32>
    %89 = arith.mulf %84, %88 : vector<16x128xf32>
    %cst_48 = arith.constant 1.000000e+00 : f32
    %90 = vector.broadcast %cst_48 : f32 to vector<16x128xf32>
    %91 = arith.subf %90, %89 : vector<16x128xf32>
    %92 = arith.mulf %63, %91 : vector<16x128xf32>
    %cst_49 = arith.constant 5.000000e-01 : f32
    %93 = vector.broadcast %cst_49 : f32 to vector<16x128xf32>
    %94 = arith.mulf %93, %58 : vector<16x128xf32>
    %cst_50 = arith.constant 1.000000e+00 : f32
    %95 = vector.broadcast %cst_50 : f32 to vector<16x128xf32>
    %96 = arith.addf %95, %92 : vector<16x128xf32>
    %97 = arith.mulf %94, %96 : vector<16x128xf32>
    %cst_51 = arith.constant dense<0.000000e+00> : vector<16x32xf32>
    %98 = tpu.matmul %97, %20, %cst_51 {dimension_numbers = #tpu.dot_dimension_numbers<[1], [0], [0], [1], [0, 0, 1, 1], [], []>, precision = #tpu.contract_precision<fp32>} : vector<16x128xf32>, vector<128x32xf32>, vector<16x32xf32> -> vector<16x32xf32>
    %99 = vector.broadcast %22 : vector<1x32xf32> to vector<16x32xf32>
    %100 = arith.addf %98, %99 : vector<16x32xf32>
    %101 = arith.addf %100, %55 : vector<16x32xf32>
    %cst_52 = arith.constant dense<0.000000e+00> : vector<16xf32>
    %102 = vector.multi_reduction <add>, %101, %cst_52 [1] : vector<16x32xf32> to vector<16xf32>
    %103 = vector.shape_cast %102 : vector<16xf32> to vector<16x1xf32>
    %cst_53 = arith.constant 3.200000e+01 : f32
    %104 = vector.broadcast %cst_53 : f32 to vector<16x1xf32>
    %105 = arith.divf %103, %104 : vector<16x1xf32>
    %106 = vector.broadcast %105 : vector<16x1xf32> to vector<16x32xf32>
    %107 = arith.subf %101, %106 : vector<16x32xf32>
    %108 = arith.mulf %107, %107 : vector<16x32xf32>
    %cst_54 = arith.constant dense<0.000000e+00> : vector<16xf32>
    %109 = vector.multi_reduction <add>, %108, %cst_54 [1] : vector<16x32xf32> to vector<16xf32>
    %110 = vector.shape_cast %109 : vector<16xf32> to vector<16x1xf32>
    %cst_55 = arith.constant 3.200000e+01 : f32
    %111 = vector.broadcast %cst_55 : f32 to vector<16x1xf32>
    %112 = arith.divf %110, %111 : vector<16x1xf32>
    %113 = vector.broadcast %105 : vector<16x1xf32> to vector<16x32xf32>
    %114 = arith.subf %101, %113 : vector<16x32xf32>
    %cst_56 = arith.constant 9.99999996E-13 : f32
    %115 = vector.broadcast %cst_56 : f32 to vector<16x1xf32>
    %116 = arith.addf %112, %115 : vector<16x1xf32>
    %117 = math.rsqrt %116 : vector<16x1xf32>
    %118 = vector.broadcast %117 : vector<16x1xf32> to vector<16x32xf32>
    %119 = arith.mulf %114, %118 : vector<16x32xf32>
    %120 = vector.broadcast %12 : vector<1x32xf32> to vector<16x32xf32>
    %121 = arith.mulf %119, %120 : vector<16x32xf32>
    %122 = vector.broadcast %14 : vector<1x32xf32> to vector<16x32xf32>
    %123 = arith.addf %121, %122 : vector<16x32xf32>
    %c1 = arith.constant 1 : index
    %c0_57 = arith.constant 0 : index
    %c0_58 = arith.constant 0 : index
    %124 = vector.load %arg3[%c1, %c0_57, %c0_58] : memref<2x20x32xf32, #tpu.memory_space<vmem>>, vector<1x8x32xf32>
    %125 = vector.shape_cast %124 : vector<1x8x32xf32> to vector<8x32xf32>
    %c1_59 = arith.constant 1 : index
    %c8_60 = arith.constant 8 : index
    %c0_61 = arith.constant 0 : index
    %126 = vector.load %arg3[%c1_59, %c8_60, %c0_61] : memref<2x20x32xf32, #tpu.memory_space<vmem>>, vector<1x8x32xf32>
    %127 = vector.shape_cast %126 : vector<1x8x32xf32> to vector<8x32xf32>
    %c1_62 = arith.constant 1 : index
    %c16_63 = arith.constant 16 : index
    %c0_64 = arith.constant 0 : index
    %128 = vector.load %arg3[%c1_62, %c16_63, %c0_64] : memref<2x20x32xf32, #tpu.memory_space<vmem>>, vector<1x1x32xf32>
    %129 = vector.shape_cast %128 : vector<1x1x32xf32> to vector<1x32xf32>
    %c1_65 = arith.constant 1 : index
    %c17_66 = arith.constant 17 : index
    %c0_67 = arith.constant 0 : index
    %130 = vector.load %arg3[%c1_65, %c17_66, %c0_67] : memref<2x20x32xf32, #tpu.memory_space<vmem>>, vector<1x1x32xf32>
    %131 = vector.shape_cast %130 : vector<1x1x32xf32> to vector<1x32xf32>
    %c1_68 = arith.constant 1 : index
    %c18_69 = arith.constant 18 : index
    %c0_70 = arith.constant 0 : index
    %132 = vector.load %arg3[%c1_68, %c18_69, %c0_70] : memref<2x20x32xf32, #tpu.memory_space<vmem>>, vector<1x1x32xf32>
    %133 = vector.shape_cast %132 : vector<1x1x32xf32> to vector<1x32xf32>
    %c1_71 = arith.constant 1 : index
    %c19_72 = arith.constant 19 : index
    %c0_73 = arith.constant 0 : index
    %134 = vector.load %arg3[%c1_71, %c19_72, %c0_73] : memref<2x20x32xf32, #tpu.memory_space<vmem>>, vector<1x1x32xf32>
    %135 = vector.shape_cast %134 : vector<1x1x32xf32> to vector<1x32xf32>
    %c1_74 = arith.constant 1 : index
    %c0_75 = arith.constant 0 : index
    %c0_76 = arith.constant 0 : index
    %136 = vector.load %arg4[%c1_74, %c0_75, %c0_76] : memref<2x33x128xf32, #tpu.memory_space<vmem>>, vector<1x32x128xf32>
    %137 = vector.shape_cast %136 : vector<1x32x128xf32> to vector<32x128xf32>
    %c1_77 = arith.constant 1 : index
    %c32_78 = arith.constant 32 : index
    %c0_79 = arith.constant 0 : index
    %138 = vector.load %arg4[%c1_77, %c32_78, %c0_79] : memref<2x33x128xf32, #tpu.memory_space<vmem>>, vector<1x1x128xf32>
    %139 = vector.shape_cast %138 : vector<1x1x128xf32> to vector<1x128xf32>
    %c1_80 = arith.constant 1 : index
    %c0_81 = arith.constant 0 : index
    %c0_82 = arith.constant 0 : index
    %140 = vector.load %arg5[%c1_80, %c0_81, %c0_82] : memref<2x129x32xf32, #tpu.memory_space<vmem>>, vector<1x128x32xf32>
    %141 = vector.shape_cast %140 : vector<1x128x32xf32> to vector<128x32xf32>
    %c1_83 = arith.constant 1 : index
    %c128_84 = arith.constant 128 : index
    %c0_85 = arith.constant 0 : index
    %142 = vector.load %arg5[%c1_83, %c128_84, %c0_85] : memref<2x129x32xf32, #tpu.memory_space<vmem>>, vector<1x1x32xf32>
    %143 = vector.shape_cast %142 : vector<1x1x32xf32> to vector<1x32xf32>
    %144 = tpu.concatenate %125, %125, %125, %125 in 0 : vector<8x32xf32>, vector<8x32xf32>, vector<8x32xf32>, vector<8x32xf32> -> vector<32x32xf32>
    %cst_86 = arith.constant 0.000000e+00 : f32
    %145 = vector.broadcast %cst_86 : f32 to vector<8x32xf32>
    %146 = arith.subf %145, %127 : vector<8x32xf32>
    %147 = tpu.concatenate %146, %146, %127, %127 in 0 : vector<8x32xf32>, vector<8x32xf32>, vector<8x32xf32>, vector<8x32xf32> -> vector<32x32xf32>
    %cst_87 = arith.constant dense<0.000000e+00> : vector<32x32xf32>
    %148 = tpu.matmul %1, %123, %cst_87 {dimension_numbers = #tpu.dot_dimension_numbers<[1], [0], [0], [1], [0, 0, 1, 1], [], []>, precision = #tpu.contract_precision<fp32>} : vector<32x16xf32>, vector<16x32xf32>, vector<32x32xf32> -> vector<32x32xf32>
    %c16_i32_88 = arith.constant 16 : i32
    %149 = tpu.dynamic_rotate %148 by %c16_i32_88 dim 0 : vector<32x32xf32>, i32 -> vector<32x32xf32>
    %150 = arith.mulf %148, %144 : vector<32x32xf32>
    %151 = arith.mulf %149, %147 : vector<32x32xf32>
    %152 = arith.addf %150, %151 : vector<32x32xf32>
    %cst_89 = arith.constant dense<0.000000e+00> : vector<16x32xf32>
    %153 = tpu.matmul %2, %152, %cst_89 {dimension_numbers = #tpu.dot_dimension_numbers<[1], [0], [0], [1], [0, 0, 1, 1], [], []>, precision = #tpu.contract_precision<fp32>} : vector<16x32xf32>, vector<32x32xf32>, vector<16x32xf32> -> vector<16x32xf32>
    %154 = arith.addf %153, %123 : vector<16x32xf32>
    %cst_90 = arith.constant dense<0.000000e+00> : vector<16xf32>
    %155 = vector.multi_reduction <add>, %154, %cst_90 [1] : vector<16x32xf32> to vector<16xf32>
    %156 = vector.shape_cast %155 : vector<16xf32> to vector<16x1xf32>
    %cst_91 = arith.constant 3.200000e+01 : f32
    %157 = vector.broadcast %cst_91 : f32 to vector<16x1xf32>
    %158 = arith.divf %156, %157 : vector<16x1xf32>
    %159 = vector.broadcast %158 : vector<16x1xf32> to vector<16x32xf32>
    %160 = arith.subf %154, %159 : vector<16x32xf32>
    %161 = arith.mulf %160, %160 : vector<16x32xf32>
    %cst_92 = arith.constant dense<0.000000e+00> : vector<16xf32>
    %162 = vector.multi_reduction <add>, %161, %cst_92 [1] : vector<16x32xf32> to vector<16xf32>
    %163 = vector.shape_cast %162 : vector<16xf32> to vector<16x1xf32>
    %cst_93 = arith.constant 3.200000e+01 : f32
    %164 = vector.broadcast %cst_93 : f32 to vector<16x1xf32>
    %165 = arith.divf %163, %164 : vector<16x1xf32>
    %166 = vector.broadcast %158 : vector<16x1xf32> to vector<16x32xf32>
    %167 = arith.subf %154, %166 : vector<16x32xf32>
    %cst_94 = arith.constant 9.99999996E-13 : f32
    %168 = vector.broadcast %cst_94 : f32 to vector<16x1xf32>
    %169 = arith.addf %165, %168 : vector<16x1xf32>
    %170 = math.rsqrt %169 : vector<16x1xf32>
    %171 = vector.broadcast %170 : vector<16x1xf32> to vector<16x32xf32>
    %172 = arith.mulf %167, %171 : vector<16x32xf32>
    %173 = vector.broadcast %129 : vector<1x32xf32> to vector<16x32xf32>
    %174 = arith.mulf %172, %173 : vector<16x32xf32>
    %175 = vector.broadcast %131 : vector<1x32xf32> to vector<16x32xf32>
    %176 = arith.addf %174, %175 : vector<16x32xf32>
    %cst_95 = arith.constant dense<0.000000e+00> : vector<16x128xf32>
    %177 = tpu.matmul %176, %137, %cst_95 {dimension_numbers = #tpu.dot_dimension_numbers<[1], [0], [0], [1], [0, 0, 1, 1], [], []>, precision = #tpu.contract_precision<fp32>} : vector<16x32xf32>, vector<32x128xf32>, vector<16x128xf32> -> vector<16x128xf32>
    %178 = vector.broadcast %139 : vector<1x128xf32> to vector<16x128xf32>
    %179 = arith.addf %177, %178 : vector<16x128xf32>
    %cst_96 = arith.constant 0.000000e+00 : f32
    %180 = vector.broadcast %cst_96 : f32 to vector<16x128xf32>
    %181 = arith.cmpf oge, %179, %180 : vector<16x128xf32>
    %cst_97 = arith.constant 1.000000e+00 : f32
    %cst_98 = arith.constant -1.000000e+00 : f32
    %182 = vector.broadcast %cst_97 : f32 to vector<16x128xf32>
    %183 = vector.broadcast %cst_98 : f32 to vector<16x128xf32>
    %184 = arith.select %181, %182, %183 : vector<16x128xi1>, vector<16x128xf32>
    %185 = math.absf %179 : vector<16x128xf32>
    %cst_99 = arith.constant 0.231641889 : f32
    %186 = vector.broadcast %cst_99 : f32 to vector<16x128xf32>
    %187 = arith.mulf %186, %185 : vector<16x128xf32>
    %cst_100 = arith.constant 1.000000e+00 : f32
    %188 = vector.broadcast %cst_100 : f32 to vector<16x128xf32>
    %189 = arith.addf %188, %187 : vector<16x128xf32>
    %cst_101 = arith.constant 1.000000e+00 : f32
    %190 = vector.broadcast %cst_101 : f32 to vector<16x128xf32>
    %191 = arith.divf %190, %189 : vector<16x128xf32>
    %cst_102 = arith.constant 1.06140542 : f32
    %192 = vector.broadcast %cst_102 : f32 to vector<16x128xf32>
    %193 = arith.mulf %192, %191 : vector<16x128xf32>
    %cst_103 = arith.constant -1.45315206 : f32
    %194 = vector.broadcast %cst_103 : f32 to vector<16x128xf32>
    %195 = arith.addf %193, %194 : vector<16x128xf32>
    %196 = arith.mulf %195, %191 : vector<16x128xf32>
    %cst_104 = arith.constant 1.42141378 : f32
    %197 = vector.broadcast %cst_104 : f32 to vector<16x128xf32>
    %198 = arith.addf %196, %197 : vector<16x128xf32>
    %199 = arith.mulf %198, %191 : vector<16x128xf32>
    %cst_105 = arith.constant -0.284496725 : f32
    %200 = vector.broadcast %cst_105 : f32 to vector<16x128xf32>
    %201 = arith.addf %199, %200 : vector<16x128xf32>
    %202 = arith.mulf %201, %191 : vector<16x128xf32>
    %cst_106 = arith.constant 0.254829586 : f32
    %203 = vector.broadcast %cst_106 : f32 to vector<16x128xf32>
    %204 = arith.addf %202, %203 : vector<16x128xf32>
    %205 = arith.mulf %204, %191 : vector<16x128xf32>
    %cst_107 = arith.constant -5.000000e-01 : f32
    %206 = vector.broadcast %cst_107 : f32 to vector<16x128xf32>
    %207 = arith.mulf %206, %185 : vector<16x128xf32>
    %208 = arith.mulf %207, %185 : vector<16x128xf32>
    %209 = math.exp %208 : vector<16x128xf32>
    %210 = arith.mulf %205, %209 : vector<16x128xf32>
    %cst_108 = arith.constant 1.000000e+00 : f32
    %211 = vector.broadcast %cst_108 : f32 to vector<16x128xf32>
    %212 = arith.subf %211, %210 : vector<16x128xf32>
    %213 = arith.mulf %184, %212 : vector<16x128xf32>
    %cst_109 = arith.constant 5.000000e-01 : f32
    %214 = vector.broadcast %cst_109 : f32 to vector<16x128xf32>
    %215 = arith.mulf %214, %179 : vector<16x128xf32>
    %cst_110 = arith.constant 1.000000e+00 : f32
    %216 = vector.broadcast %cst_110 : f32 to vector<16x128xf32>
    %217 = arith.addf %216, %213 : vector<16x128xf32>
    %218 = arith.mulf %215, %217 : vector<16x128xf32>
    %cst_111 = arith.constant dense<0.000000e+00> : vector<16x32xf32>
    %219 = tpu.matmul %218, %141, %cst_111 {dimension_numbers = #tpu.dot_dimension_numbers<[1], [0], [0], [1], [0, 0, 1, 1], [], []>, precision = #tpu.contract_precision<fp32>} : vector<16x128xf32>, vector<128x32xf32>, vector<16x32xf32> -> vector<16x32xf32>
    %220 = vector.broadcast %143 : vector<1x32xf32> to vector<16x32xf32>
    %221 = arith.addf %219, %220 : vector<16x32xf32>
    %222 = arith.addf %221, %176 : vector<16x32xf32>
    %cst_112 = arith.constant dense<0.000000e+00> : vector<16xf32>
    %223 = vector.multi_reduction <add>, %222, %cst_112 [1] : vector<16x32xf32> to vector<16xf32>
    %224 = vector.shape_cast %223 : vector<16xf32> to vector<16x1xf32>
    %cst_113 = arith.constant 3.200000e+01 : f32
    %225 = vector.broadcast %cst_113 : f32 to vector<16x1xf32>
    %226 = arith.divf %224, %225 : vector<16x1xf32>
    %227 = vector.broadcast %226 : vector<16x1xf32> to vector<16x32xf32>
    %228 = arith.subf %222, %227 : vector<16x32xf32>
    %229 = arith.mulf %228, %228 : vector<16x32xf32>
    %cst_114 = arith.constant dense<0.000000e+00> : vector<16xf32>
    %230 = vector.multi_reduction <add>, %229, %cst_114 [1] : vector<16x32xf32> to vector<16xf32>
    %231 = vector.shape_cast %230 : vector<16xf32> to vector<16x1xf32>
    %cst_115 = arith.constant 3.200000e+01 : f32
    %232 = vector.broadcast %cst_115 : f32 to vector<16x1xf32>
    %233 = arith.divf %231, %232 : vector<16x1xf32>
    %234 = vector.broadcast %226 : vector<16x1xf32> to vector<16x32xf32>
    %235 = arith.subf %222, %234 : vector<16x32xf32>
    %cst_116 = arith.constant 9.99999996E-13 : f32
    %236 = vector.broadcast %cst_116 : f32 to vector<16x1xf32>
    %237 = arith.addf %233, %236 : vector<16x1xf32>
    %238 = math.rsqrt %237 : vector<16x1xf32>
    %239 = vector.broadcast %238 : vector<16x1xf32> to vector<16x32xf32>
    %240 = arith.mulf %235, %239 : vector<16x32xf32>
    %241 = vector.broadcast %133 : vector<1x32xf32> to vector<16x32xf32>
    %242 = arith.mulf %240, %241 : vector<16x32xf32>
    %243 = vector.broadcast %135 : vector<1x32xf32> to vector<16x32xf32>
    %244 = arith.addf %242, %243 : vector<16x32xf32>
    %c0_117 = arith.constant 0 : index
    %c0_118 = arith.constant 0 : index
    %245 = vector.load %arg6[%c0_117, %c0_118] : memref<16x32xf32, #tpu.memory_space<vmem>>, vector<16x32xf32>
    tpu.vector_store %arg6[%c0_117, %c0_118], %244 {strides = array<i32>} : memref<16x32xf32, #tpu.memory_space<vmem>>, vector<16x32xf32>,
    return
  }
}

</mosaic_0001>

<bundles_post_ra>
// kernel: fmlprec_forward.1
= control target key start
LH: loop header
LB: loop body
LE: loop exit
PB: predicated region body
PF: predicated region fallthrough
CT: control target
= control target key end

     0   :  { %vm61_vm0 = vcmask 130048   ;;  %s3770_s0 = inlined_call_operand.vmem [shape: f32[16,32], index: 0, kind: input, shape index: {}]   ;;  %s3771_s1 = inlined_call_operand.vmem [shape: f32[32,16], index: 1, kind: input, shape index: {}]   ;;  %s3772_s2 = inlined_call_operand.vmem [shape: f32[16,32], index: 2, kind: input, shape index: {}]   ;;  %s3773_s3 = inlined_call_operand.vmem [shape: f32[2,20,32], index: 3, kind: input, shape index: {}]   ;;  %s3774_s4 = inlined_call_operand.vmem [shape: f32[2,33,128], index: 4, kind: input, shape index: {}]   ;;  %s3775_s5 = inlined_call_operand.vmem [shape: f32[2,129,32], index: 5, kind: input, shape index: {}]   ;;  %s3776_s6 = inlined_call_operand.hbm [shape: f32[16,32], index: 6, kind: output, shape index: {}]  }
   0x1   :  { %v2804_v0 = vld [vmem:[%s3770_s0 + $0x8] sm:$0xff]  ;;  %v2809_v1 = vld [vmem:[%s3770_s0] sm:$0xff]  ;;  %v28_v2 = vld [vmem:[%s3771_s1 + $0x10] sm:$0xff] }
   0x2   :  { %v88_v3 = vand.u32 4294901760, %v2804_v0  ;;  %v90_v4 = vand.u32 4294901760, %v2809_v1  ;;  %v69_v5 = vsel %vm61_vm0, %v28_v2, 0  ;;  %v29_v6 = vld [vmem:[%s3771_s1 + $0x18] sm:$0xff]  ;;  %v26_v7 = vld [vmem:[%s3771_s1] sm:$0xff]  ;;  %v27_v8 = vld [vmem:[%s3771_s1 + $0x8] sm:$0xff] }
   0x3   :  { %v2825_v9 = vand.u32 4294901760, %v69_v5  ;;  %v72_v10 = vsel %vm61_vm0, %v29_v6, 0  ;;  %v63_v11 = vsel %vm61_vm0, %v26_v7, 0  ;;  %v66_v12 = vsel %vm61_vm0, %v27_v8, 0 }
   0x4   :  { %2680 = vmatpush.msra.mxu2 %v88_v3  ;;  %v140_v13 = vsub.f32 %v2804_v0, %v88_v3  ;;  %v146_v14 = vsub.f32 %v2809_v1, %v90_v4  ;;  %89 = vmatpush.msra.mxu0 %v88_v3  ;;  %v2829_v15 = vand.u32 4294901760, %v72_v10  ;;  %v2831_v16 = vand.u32 4294901760, %v63_v11 }
   0x5   :  { %v2834_v17 = vsub.f32 %v69_v5, %v2825_v9  ;;  %v2836_v18 = vand.u32 4294901760, %v66_v12 }
   0x6   :  { %3806 = vst [vmem:[#allocation5_spill] sm:$0xff] %v2829_v15  ;;  %2681 = vmatpush.msra.mxu2 %v90_v4  ;;  %v141_v19 = vand.u32 4294901760, %v140_v13  ;;  %v147_v20 = vand.u32 4294901760, %v146_v14  ;;  %v2839_v21 = vsub.f32 %v72_v10, %v2829_v15  ;;  %91 = vmatpush.msra.mxu0 %v90_v4  ;;  %v2842_v22 = vsub.f32 %v63_v11, %v2831_v16 }
   0x7   :  { %v2845_v23 = vand.u32 4294901760, %v2834_v17  ;;  %v2848_v24 = vsub.f32 %v66_v12, %v2836_v18 }
   0x8   :  { %3807 = vst [vmem:[#allocation6_spill] sm:$0xff] %v2839_v21  ;;  %184 = vmatpush.msrb.mxu2 %v140_v13  ;;  %v142_v25 = vsub.f32 %v140_v13, %v141_v19  ;;  %v148_v26 = vsub.f32 %v146_v14, %v147_v20  ;;  %v2851_v27 = vand.u32 4294901760, %v2842_v22  ;;  %269 = vmatpush.msrb.mxu0 %v141_v19  ;;  %v2856_v29 = vand.u32 4294901760, %v2839_v21 }
   0x9   :  { %v111_v28 = vsub.f32 %v2834_v17, %v2845_v23 }
   0xa   :  { %3808 = vst [vmem:[#allocation7_spill] sm:$0xff] %v2856_v29  ;;  %187 = vmatpush.msrb.mxu2 %v146_v14 }
   0xb   :  { %11 = vsyncpa [#allocation3], 0  ;;  %v143_v30 = vand.u32 4294901760, %v142_v25  ;;  %v149_v31 = vand.u32 4294901760, %v148_v26  ;;  %v95_v32 = vsub.f32 %v2842_v22, %v2851_v27  ;;  %273 = vmatpush.msrb.mxu0 %v147_v20  ;;  %v2860_v33 = vand.u32 4294901760, %v111_v28  ;;  %v30_v7 = vld [vmem:[%s3772_s2] sm:$0xff] }
   0xc   :  { %v2863_v34 = vand.u32 4294901760, %v2848_v24  ;;  %v119_v36 = vsub.f32 %v2839_v21, %v2856_v29  ;;  %vm338_vm1 = vcmask 261120   ;;  %v33_v12 = vld [vmem:[%s3773_s3 + $0x8] sm:$0xff]  ;;  %v32_v25 = vld [vmem:[%s3773_s3] sm:$0xff]  ;;  %s2763_s13 = smov [#allocation2]   ;;  %s2640_s16 = sshll.u32 %s3776_s6, 4  ;;  %s2641_s16 = int_to_ptr.hbm [resolvable:$true] %s2640_s16 }
   0xd   :  { %2682 = vmatpush.msra.mxu3 %v143_v30  ;;  %144 = vmatpush.msra.mxu1 %v143_v30  ;;  %v2865_v35 = vand.u32 4294901760, %v95_v32  ;;  %v60_v14 = vsub.f32 0.0, %v33_v12  ;;  %v340_v20 = vsel %vm338_vm1, %v30_v7, 0  ;;  %s2638_s14 = sshll.u32 %s2763_s13, 4  ;;  %s2639_s14 = int_to_ptr.vmem [resolvable:$true] %s2638_s14 }
   0xe   :  { %113 = vmatmul.f32.vlgmr.msra.gmra.mxu2 %v2860_v33  ;;  %v103_v37 = vsub.f32 %v2848_v24, %v2863_v34  ;;  %v2875_v38 = vand.u32 4294901760, %v119_v36 }
   0xf   :  { %2683 = vmatpush.msra.mxu3 %v149_v31  ;;  %150 = vmatpush.msra.mxu1 %v149_v31 }
  0x10   :  { %160 = vmatmul.f32.vlgmr.msra.gmra.mxu3 %v2825_v9  ;;  %97 = vmatmul.f32.vlgmr.msra.gmra.mxu0 %v2865_v35  ;;  %v2877_v39 = vand.u32 4294901760, %v103_v37 }
  0x11   :  { %152 = vmatmul.f32.vlgmr.msra.gmra.mxu1 %v2831_v16  ;;  %224 = vmatpush.msrb.mxu3 %v88_v3 }
  0x12   :  { %306 = vmatpush.msrb.mxu1 %v88_v3 }
  0x13   :  { %226 = vmatpush.msrb.mxu3 %v90_v4 }
  0x14   :  { %308 = vmatpush.msrb.mxu1 %v90_v4 }
  0x16   :  { %121 = vmatmul.f32.gmra.mxu2 %v2875_v38 }
  0x18   :  { %164 = vmatmul.f32.gmra.mxu3 %v2829_v15  ;;  %105 = vmatmul.f32.gmra.mxu0 %v2877_v39 }
  0x19   :  { %156 = vmatmul.f32.gmra.mxu1 %v2836_v18 }
  0x1e   :  { %190 = vmatmul.f32.vlgmr.msrb.gmra.mxu2 %v2842_v22 }
  0x20   :  { %230 = vmatmul.f32.vlgmr.msrb.gmra.mxu3 %v2851_v27  ;;  %275 = vmatmul.f32.vlgmr.msrb.gmra.mxu0 %v2831_v16 }
  0x21   :  { %310 = vmatmul.f32.vlgmr.msrb.gmra.mxu1 %v2831_v16 }
  0x26   :  { %195 = vmatmul.f32.gmra.mxu2 %v2848_v24 }
  0x28   :  { %236 = vmatmul.f32.gmra.mxu3 %v2863_v34  ;;  %279 = vmatmul.f32.gmra.mxu0 %v2836_v18 }
  0x29   :  { %314 = vmatmul.f32.gmra.mxu1 %v2836_v18 }
  0x2e   :  { %200 = vmatmul.f32.gmra.mxu2 %v2834_v17 }
  0x30   :  { %242 = vmatmul.f32.gmra.mxu3 %v2845_v23  ;;  %283 = vmatmul.f32.gmra.mxu0 %v2825_v9 }
  0x31   :  { %318 = vmatmul.f32.gmra.mxu1 %v2825_v9 }
  0x36   :  { %205 = vmatmul.f32.gmra.mxu2 %v2839_v21 }
  0x38   :  { %248 = vmatmul.f32.gmra.mxu3 %v2856_v29  ;;  %287 = vmatmul.f32.gmra.mxu0 %v2829_v15 }
  0x39   :  { %322 = vmatmul.f32.gmra.mxu1 %v2829_v15 }
  0x8d   :  { %v98_v40 = vpop.f32.mrf.mxu0 }
  0x8e   :  { %v153_v41 = vpop.f32.mrf.mxu1 }
  0x8f   :  { %v154_v53 = vadd.f32 %v153_v41, %v98_v40  ;;  %v2909_v40 = vand.u32 4294901760, %v340_v20 }
  0x91   :  { %v114_v42 = vpop.f32.mrf.mxu2  ;;  %3809 = vst [vmem:[#allocation8_spill] sm:$0xff] %v2909_v40 }
  0x93   :  { %v161_v43 = vpop.f32.mrf.mxu3 }
  0x94   :  { %v162_v59 = vadd.f32 %v161_v43, %v114_v42 }
  0x95   :  { %v106_v44 = vpop.f32.mrf.mxu0 }
  0x96   :  { %v157_v45 = vpop.f32.mrf.mxu1 }
  0x97   :  { %v158_v60 = vadd.f32 %v157_v45, %v106_v44  ;;  %v31_v45 = vld [vmem:[%s3772_s2 + $0x8] sm:$0xff] }
  0x99   :  { %v122_v46 = vpop.f32.mrf.mxu2 }
  0x9b   :  { %v165_v47 = vpop.f32.mrf.mxu3 }
  0x9c   :  { %v166_v13 = vadd.f32 %v165_v47, %v122_v46 }
  0x9d   :  { %v276_v48 = vpop.f32.mrf.mxu0 }
  0x9e   :  { %v311_v49 = vpop.f32.mrf.mxu1 }
  0xa1   :  { %v191_v50 = vpop.f32.mrf.mxu2 }
  0xa2   :  { %v192_v56 = vadd.f32 %v191_v50, %v154_v53  ;;  %v343_v53 = vsel %vm338_vm1, %v31_v45, 0 }
  0xa3   :  { %v231_v51 = vpop.f32.mrf.mxu3 }
  0xa4   :  { %v232_v58 = vadd.f32 %v231_v51, %v192_v56 }
  0xa5   :  { %v280_v52 = vpop.f32.mrf.mxu0 }
  0xa6   :  { %v315_v55 = vpop.f32.mrf.mxu1  ;;  %v277_v63 = vadd.f32 %v276_v48, %v232_v58 }
  0xa8   :  { %v312_v8 = vadd.f32 %v311_v49, %v277_v63  ;;  %v2915_v49 = vsub.f32 %v340_v20, %v2909_v40 }
  0xa9   :  { %v196_v54 = vpop.f32.mrf.mxu2 }
  0xaa   :  { %v197_v2 = vadd.f32 %v196_v54, %v158_v60  ;;  %v332_v28 = vmul.f32 %v312_v8, %v33_v12  ;;  %v326_v46 = vmul.f32 %v312_v8, %v32_v25  ;;  %3810 = vst [vmem:[#allocation9_spill] sm:$0xff] %v2915_v49  ;;  %v2921_v60 = vand.u32 4294901760, %v343_v53 }
  0xab   :  { %v237_v57 = vpop.f32.mrf.mxu3 }
  0xac   :  { %v238_v10 = vadd.f32 %v237_v57, %v197_v2  ;;  %3812 = vst [vmem:[#allocation11_spill] sm:$0xff] %v2921_v60 }
  0xad   :  { %v284_v62 = vpop.f32.mrf.mxu0 }
  0xae   :  { %v319_v5 = vpop.f32.mrf.mxu1  ;;  %v281_v30 = vadd.f32 %v280_v52, %v238_v10 }
  0xb0   :  { %v316_v47 = vadd.f32 %v315_v55, %v281_v30 }
  0xb1   :  { %v201_v61 = vpop.f32.mrf.mxu2 }
  0xb2   :  { %v202_v3 = vadd.f32 %v201_v61, %v162_v59  ;;  %v327_v54 = vmul.f32 %v316_v47, %v32_v25  ;;  %v333_v56 = vmul.f32 %v316_v47, %v33_v12  ;;  %v2919_v59 = vand.u32 4294901760, %v2915_v49 }
  0xb3   :  { %v243_v4 = vpop.f32.mrf.mxu3 }
  0xb4   :  { %v244_v6 = vadd.f32 %v243_v4, %v202_v3  ;;  %3811 = vst [vmem:[#allocation10_spill] sm:$0xff] %v2919_v59  ;;  %v368_v4 = vsub.f32 %v2915_v49, %v2919_v59 }
  0xb5   :  { %v288_v37 = vpop.f32.mrf.mxu0 }
  0xb6   :  { %v285_v11 = vadd.f32 %v284_v62, %v244_v6  ;;  %v323_v44 = vpop.f32.mrf.mxu1 }
  0xb8   :  { %v320_v19 = vadd.f32 %v319_v5, %v285_v11  ;;  %v2926_v5 = vsub.f32 %v343_v53, %v2921_v60 }
  0xb9   :  { %v206_v26 = vpop.f32.mrf.mxu2 }
  0xba   :  { %v328_v31 = vmul.f32 %v320_v19, %v32_v25  ;;  %v207_v32 = vadd.f32 %v206_v26, %v166_v13  ;;  %v330_v41 = vmul.f32 %v320_v19, %v60_v14  ;;  %3813 = vst [vmem:[#allocation12_spill] sm:$0xff] %v2926_v5  ;;  %v2928_v13 = vand.u32 4294901760, %v368_v4 }
  0xbb   :  { %v249_v36 = vpop.f32.mrf.mxu3 }
  0xbc   :  { %v336_v42 = vadd.f32 %v332_v28, %v328_v31  ;;  %v250_v43 = vadd.f32 %v249_v36, %v207_v32  ;;  %v334_v50 = vadd.f32 %v330_v41, %v326_v46  ;;  %3814 = vst [vmem:[#allocation13_spill] sm:$0xff] %v2928_v13 }
  0xbe   :  { %v289_v48 = vadd.f32 %v288_v37, %v250_v43  ;;  %v359_v51 = vand.u32 4294901760, %v336_v42  ;;  %v363_v61 = vand.u32 4294901760, %v334_v50 }
  0xc0   :  { %v324_v52 = vadd.f32 %v323_v44, %v289_v48  ;;  %v401_v55 = vsub.f32 %v336_v42, %v359_v51  ;;  %v413_v6 = vsub.f32 %v334_v50, %v363_v61 }
  0xc2   :  { %v329_v57 = vmul.f32 %v324_v52, %v32_v25  ;;  %v331_v58 = vmul.f32 %v324_v52, %v60_v14  ;;  %v402_v10 = vand.u32 4294901760, %v401_v55  ;;  %v2931_v14 = vand.u32 4294901760, %v2926_v5 }
  0xc3   :  { %v414_v25 = vand.u32 4294901760, %v413_v6 }
  0xc4   :  { %v335_v62 = vadd.f32 %v331_v58, %v327_v54  ;;  %v337_v63 = vadd.f32 %v333_v56, %v329_v57  ;;  %3815 = vst [vmem:[#allocation14_spill] sm:$0xff] %v2931_v14  ;;  %v403_v20 = vsub.f32 %v401_v55, %v402_v10  ;;  %v376_v30 = vsub.f32 %v2926_v5, %v2931_v14 }
  0xc5   :  { %v415_v32 = vsub.f32 %v413_v6, %v414_v25 }
  0xc6   :  { %v357_v2 = vand.u32 4294901760, %v337_v63  ;;  %v361_v3 = vand.u32 4294901760, %v335_v62  ;;  %v404_v31 = vand.u32 4294901760, %v403_v20  ;;  %v2937_v37 = vand.u32 4294901760, %v376_v30 }
  0xc7   :  { %v416_v41 = vand.u32 4294901760, %v415_v32 }
  0xc8   :  { %v395_v7 = vsub.f32 %v337_v63, %v357_v2  ;;  %v407_v8 = vsub.f32 %v335_v62, %v361_v3  ;;  %358 = vmatpush.msra.mxu2 %v357_v2  ;;  %545 = vmatpush.msra.mxu1 %v357_v2  ;;  %3816 = vst [vmem:[#allocation15_spill] sm:$0xff] %v2937_v37 }
  0xca   :  { %360 = vmatpush.msra.mxu2 %v359_v51  ;;  %547 = vmatpush.msra.mxu1 %v359_v51  ;;  %v396_v11 = vand.u32 4294901760, %v395_v7  ;;  %v408_v12 = vand.u32 4294901760, %v407_v8 }
  0xcc   :  { %362 = vmatpush.msra.mxu2 %v361_v3  ;;  %510 = vmatpush.msra.mxu0 %v396_v11  ;;  %v397_v19 = vsub.f32 %v395_v7, %v396_v11  ;;  %v409_v28 = vsub.f32 %v407_v8, %v408_v12 }
  0xcd   :  { %549 = vmatpush.msra.mxu1 %v361_v3 }
  0xce   :  { %364 = vmatpush.msra.mxu2 %v363_v61  ;;  %514 = vmatpush.msra.mxu0 %v402_v10  ;;  %v398_v26 = vand.u32 4294901760, %v397_v19  ;;  %v410_v36 = vand.u32 4294901760, %v409_v28  ;;  %v2761_v10 = vmov 32.0  }
  0xcf   :  { %551 = vmatpush.msra.mxu1 %v363_v61  ;;  %370 = vmatmul.f32.vlgmr.msra.gmra.mxu2 %v2928_v13  ;;  %2701 = vrcp.f32 %v2761_v10 }
  0xd0   :  { %441 = vmatpush.msrb.mxu2 %v395_v7  ;;  %399 = vmatpush.msra.mxu3 %v398_v26 }
  0xd1   :  { %518 = vmatpush.msra.mxu0 %v408_v12  ;;  %553 = vmatmul.f32.vlgmr.msra.gmra.mxu1 %v2909_v40 }
  0xd2   :  { %444 = vmatpush.msrb.mxu2 %v401_v55  ;;  %405 = vmatpush.msra.mxu3 %v404_v31 }
  0xd3   :  { %522 = vmatpush.msra.mxu0 %v414_v25 }
  0xd4   :  { %447 = vmatpush.msrb.mxu2 %v407_v8  ;;  %411 = vmatpush.msra.mxu3 %v410_v36 }
  0xd5   :  { %524 = vmatmul.f32.vlgmr.msra.gmra.mxu0 %v2909_v40 }
  0xd6   :  { %450 = vmatpush.msrb.mxu2 %v413_v6  ;;  %417 = vmatpush.msra.mxu3 %v416_v41 }
  0xd7   :  { %378 = vmatmul.f32.gmra.mxu2 %v2937_v37  ;;  %419 = vmatmul.f32.vlgmr.msra.gmra.mxu3 %v2909_v40  ;;  %v44_v37 = vld [vmem:[%s3775_s5 + $0x8] sm:$0xff] }
  0xd8   :  { %475 = vmatpush.msrb.mxu3 %v357_v2 }
  0xd9   :  { %557 = vmatmul.f32.gmra.mxu1 %v2921_v60 }
  0xda   :  { %477 = vmatpush.msrb.mxu3 %v359_v51 }
  0xdc   :  { %479 = vmatpush.msrb.mxu3 %v361_v3 }
  0xdd   :  { %528 = vmatmul.f32.gmra.mxu0 %v2921_v60 }
  0xde   :  { %481 = vmatpush.msrb.mxu3 %v363_v61 }
  0xdf   :  { %423 = vmatmul.f32.gmra.mxu3 %v2921_v60  ;;  %453 = vmatmul.f32.vlgmr.msrb.gmra.mxu2 %v2915_v49 }
  0xe7   :  { %458 = vmatmul.f32.gmra.mxu2 %v2926_v5  ;;  %485 = vmatmul.f32.vlgmr.msrb.gmra.mxu3 %v2919_v59 }
  0xef   :  { %491 = vmatmul.f32.gmra.mxu3 %v2931_v14 }
 0x14e   :  { %v554_v53 = vpop.f32.mrf.mxu1 }
 0x152   :  { %v371_v42 = vpop.f32.mrf.mxu2  ;;  %v525_v50 = vpop.f32.mrf.mxu0 }
 0x153   :  { %v372_v46 = vadd.f32 %v371_v42, %v2809_v1 }
 0x156   :  { %v558_v4 = vpop.f32.mrf.mxu1 }
 0x15a   :  { %v379_v43 = vpop.f32.mrf.mxu2  ;;  %v420_v44 = vpop.f32.mrf.mxu3 }
 0x15b   :  { %v421_v48 = vadd.f32 %v420_v44, %v372_v46  ;;  %v380_v54 = vadd.f32 %v379_v43, %v2804_v0  ;;  %v529_v3 = vpop.f32.mrf.mxu0  ;;  %v2702_v0 = vpop.eup %2701 }
 0x15c   :  { %v568_v11 = vmul.f32 32.0, %v2702_v0  ;;  %vm572_vm2 = vweird.f32 %v2702_v0 }
 0x15e   :  { %v569_v12 = vsub.f32 1.0, %v568_v11 }
 0x160   :  { %v570_v19 = vmul.f32 %v2702_v0, %v569_v12 }
 0x162   :  { %v424_v45 = vpop.f32.mrf.mxu3  ;;  %v454_v47 = vpop.f32.mrf.mxu2  ;;  %v571_v20 = vadd.f32 %v2702_v0, %v570_v19 }
 0x163   :  { %v455_v51 = vadd.f32 %v454_v47, %v421_v48  ;;  %v425_v61 = vadd.f32 %v424_v45, %v380_v54  ;;  %v41_v45 = vld [vmem:[%s3774_s4 + $0x18] sm:$0xff]  ;;  %v40_v47 = vld [vmem:[%s3774_s4 + $0x10] sm:$0xff] }
 0x164   :  { %v2953_v25 = vsel %vm572_vm2, %v2702_v0, %v571_v20  ;;  %v637_v46 = vand.u32 4294901760, %v41_v45 }
 0x166   :  { %v675_v48 = vsub.f32 %v41_v45, %v637_v46  ;;  %755 = vmatpush.msrb.mxu1 %v637_v46  ;;  %638 = vmatpush.msra.mxu2 %v637_v46 }
 0x168   :  { %721 = vmatpush.msrb.mxu0 %v675_v48 }
 0x16a   :  { %v486_v52 = vpop.f32.mrf.mxu3  ;;  %v459_v58 = vpop.f32.mrf.mxu2 }
 0x16b   :  { %v487_v56 = vadd.f32 %v486_v52, %v455_v51  ;;  %v460_v62 = vadd.f32 %v459_v58, %v425_v61  ;;  %v39_v51 = vld [vmem:[%s3774_s4 + $0x8] sm:$0xff]  ;;  %v676_v52 = vand.u32 4294901760, %v675_v48 }
 0x16c   :  { %v641_v54 = vand.u32 4294901760, %v39_v51 }
 0x16d   :  { %v526_v57 = vadd.f32 %v525_v50, %v487_v56  ;;  %v639_v50 = vand.u32 4294901760, %v40_v47  ;;  %v38_v56 = vld [vmem:[%s3774_s4] sm:$0xff] }
 0x16e   :  { %v687_v61 = vsub.f32 %v39_v51, %v641_v54  ;;  %v2690_v51 = vld [vmem:[%s3773_s3 + $0x11] ss:$0 sm:$0xff] }
 0x16f   :  { %v555_v55 = vadd.f32 %v554_v53, %v526_v57  ;;  %v681_v53 = vsub.f32 %v40_v47, %v639_v50  ;;  %757 = vmatpush.msrb.mxu1 %v639_v50  ;;  %640 = vmatpush.msra.mxu2 %v639_v50  ;;  %v677_v57 = vsub.f32 %v675_v48, %v676_v52 }
 0x171   :  { %v561_v63 = vsel %vm338_vm1, %v555_v55, 0.0  ;;  %v682_v58 = vand.u32 4294901760, %v681_v53  ;;  %724 = vmatpush.msrb.mxu0 %v681_v53  ;;  %759 = vmatpush.msrb.mxu1 %v641_v54 }
 0x172   :  { %v492_v2 = vpop.f32.mrf.mxu3  ;;  %562 = vadd.xlane.f32.xlu0 %v561_v63  ;;  %642 = vmatpush.msra.mxu2 %v641_v54 }
 0x173   :  { %v493_v1 = vadd.f32 %v492_v2, %v460_v62  ;;  %v678_v62 = vand.u32 4294901760, %v677_v57  ;;  %v683_v63 = vsub.f32 %v681_v53, %v682_v58  ;;  %v688_v2 = vand.u32 4294901760, %v687_v61  ;;  %727 = vmatpush.msrb.mxu0 %v687_v61 }
 0x175   :  { %v530_v6 = vadd.f32 %v529_v3, %v493_v1  ;;  %679 = vmatpush.msra.mxu3 %v678_v62  ;;  %v684_v1 = vand.u32 4294901760, %v683_v63 }
 0x177   :  { %v559_v7 = vadd.f32 %v558_v4, %v530_v6  ;;  %v689_v4 = vsub.f32 %v687_v61, %v688_v2  ;;  %685 = vmatpush.msra.mxu3 %v684_v1 }
 0x179   :  { %v564_v8 = vsel %vm338_vm1, %v559_v7, 0.0 }
 0x17a   :  { %565 = vadd.xlane.f32.xlu0 %v564_v8 }
 0x1e5   :  { %v563_v26 = vpop.xlane.xlu0 %562 }
 0x1e6   :  { %v574_v28 = vmul.f32 %v2953_v25, %v563_v26 }
 0x1e8   :  { %v2956_v30 = vsub.f32 %v555_v55, %v574_v28  ;;  %v643_v55 = vand.u32 4294901760, %v38_v56 }
 0x1ea   :  { %v578_v31 = vmul.f32 %v2956_v30, %v2956_v30  ;;  %v693_v3 = vsub.f32 %v38_v56, %v643_v55  ;;  %761 = vmatpush.msrb.mxu1 %v643_v55  ;;  %644 = vmatpush.msra.mxu2 %v643_v55 }
 0x1ec   :  { %v580_v32 = vsel %vm338_vm1, %v578_v31, 0.0  ;;  %v694_v6 = vand.u32 4294901760, %v693_v3  ;;  %730 = vmatpush.msrb.mxu0 %v693_v3  ;;  %790 = vmatpush.msrb.mxu2 %v676_v52 }
 0x1ed   :  { %581 = vadd.xlane.f32.xlu1 %v580_v32  ;;  %v566_v36 = vpop.xlane.xlu0 %565 }
 0x1ee   :  { %v575_v41 = vmul.f32 %v2953_v25, %v566_v36  ;;  %v695_v8 = vsub.f32 %v693_v3, %v694_v6  ;;  %794 = vmatpush.msrb.mxu2 %v682_v58 }
 0x1f0   :  { %v2962_v42 = vsub.f32 %v559_v7, %v575_v41  ;;  %v690_v7 = vand.u32 4294901760, %v689_v4  ;;  %v696_v10 = vand.u32 4294901760, %v695_v8  ;;  %798 = vmatpush.msrb.mxu2 %v688_v2 }
 0x1f2   :  { %v579_v43 = vmul.f32 %v2962_v42, %v2962_v42  ;;  %691 = vmatpush.msra.mxu3 %v690_v7  ;;  %802 = vmatpush.msrb.mxu2 %v694_v6 }
 0x1f4   :  { %v583_v44 = vsel %vm338_vm1, %v579_v43, 0.0  ;;  %697 = vmatpush.msra.mxu3 %v696_v10 }
 0x1f5   :  { %584 = vadd.xlane.f32.xlu1 %v583_v44 }
 0x1f6   :  { %825 = vmatpush.msrb.mxu3 %v637_v46  ;;  %v2689_v46 = vld [vmem:[%s3773_s3 + $0x10] ss:$0 sm:$0xff] }
 0x1f8   :  { %827 = vmatpush.msrb.mxu3 %v639_v50 }
 0x1fa   :  { %829 = vmatpush.msrb.mxu3 %v641_v54 }
 0x1fc   :  { %831 = vmatpush.msrb.mxu3 %v643_v55 }
 0x260   :  { %v582_v0 = vpop.xlane.xlu1 %581 }
 0x261   :  { %v586_v11 = vmul.f32 %v582_v0, %v2953_v25 }
 0x263   :  { %v588_v12 = vadd.f32 1e-12, %v586_v11  ;;  %v58_v11 = vld [vmem:[%s3775_s5 + $0x78] sm:$0xff] }
 0x265   :  { %2703 = vrsqrt.f32 %v588_v12  ;;  %vm596_vm4 = vweird.f32 %v588_v12 }
 0x268   :  { %v585_v19 = vpop.xlane.xlu1 %584 }
 0x269   :  { %v587_v20 = vmul.f32 %v585_v19, %v2953_v25  ;;  %v57_v19 = vld [vmem:[%s3775_s5 + $0x70] sm:$0xff] }
 0x26b   :  { %v2704_v26 = vpop.eup %2703  ;;  %v589_v28 = vadd.f32 1e-12, %v587_v20 }
 0x26c   :  { %v591_v31 = vmul.f32 %v2704_v26, %v588_v12  ;;  %vm597_vm3 = vweird.f32 %v2704_v26  ;;  %v3000_v12 = vand.u32 4294901760, %v58_v11 }
 0x26d   :  { %2705 = vrsqrt.f32 %v589_v28  ;;  %vm598_vm5 = vmor %vm596_vm4, %vm597_vm3  ;;  %vm606_vm7 = vweird.f32 %v589_v28 }
 0x26e   :  { %v592_v32 = vmul.f32 %v2704_v26, %v591_v31  ;;  %v3006_v20 = vsub.f32 %v58_v11, %v3000_v12  ;;  %921 = vmatpush.msra.mxu0 %v3000_v12 }
 0x270   :  { %v593_v36 = vmul.f32 0.5, %v592_v32  ;;  %v3784_v31 = vand.u32 4294901760, %v3006_v20 }
 0x272   :  { %v594_v41 = vsub.f32 1.5, %v593_v36 }
 0x273   :  { %v2706_v43 = vpop.eup %2705 }
 0x274   :  { %v595_v44 = vmul.f32 %v2704_v26, %v594_v41  ;;  %v601_v45 = vmul.f32 %v2706_v43, %v589_v28  ;;  %vm607_vm6 = vweird.f32 %v2706_v43  ;;  %v56_v28 = vld [vmem:[%s3775_s5 + $0x68] sm:$0xff]  ;;  %v55_v41 = vld [vmem:[%s3775_s5 + $0x60] sm:$0xff] }
 0x275   :  { %vm608_vm8 = vmor %vm606_vm7, %vm607_vm6  ;;  %v3019_v36 = vand.u32 4294901760, %v56_v28 }
 0x276   :  { %v599_v47 = vsel %vm598_vm5, %v2704_v26, %v595_v44  ;;  %v602_v48 = vmul.f32 %v2706_v43, %v601_v45  ;;  %v3008_v26 = vand.u32 4294901760, %v57_v19 }
 0x277   :  { %v610_v50 = vmul.f32 %v599_v47, %v2956_v30  ;;  %v3032_v45 = vsub.f32 %v56_v28, %v3019_v36  ;;  %v54_v47 = vld [vmem:[%s3775_s5 + $0x58] sm:$0xff] }
 0x278   :  { %v603_v52 = vmul.f32 0.5, %v602_v48  ;;  %v3017_v32 = vsub.f32 %v57_v19, %v3008_v26  ;;  %923 = vmatpush.msra.mxu0 %v3008_v26 }
 0x279   :  { %v613_v53 = vmul.f32 %v2689_v46, %v610_v50 }
 0x27a   :  { %v604_v54 = vsub.f32 1.5, %v603_v52  ;;  %v3783_v44 = vand.u32 4294901760, %v3017_v32  ;;  %925 = vmatpush.msra.mxu0 %v3019_v36 }
 0x27b   :  { %v2988_v56 = vadd.f32 %v2690_v51, %v613_v53 }
 0x27c   :  { %v605_v57 = vmul.f32 %v2706_v43, %v604_v54  ;;  %v978_v50 = vsub.f32 %v3017_v32, %v3783_v44  ;;  %v3051_v54 = vand.u32 4294901760, %v54_v47 }
 0x27d   :  { %v620_v58 = vsel %vm338_vm1, %v2988_v56, 0 }
 0x27e   :  { %v609_v61 = vsel %vm608_vm8, %v2706_v43, %v605_v57  ;;  %v645_v55 = vand.u32 4294901760, %v620_v58  ;;  %v972_v43 = vsub.f32 %v3006_v20, %v3784_v31  ;;  %v53_v57 = vld [vmem:[%s3775_s5 + $0x50] sm:$0xff] }
 0x27f   :  { %v611_v30 = vmul.f32 %v609_v61, %v2962_v42 }
 0x280   :  { %699 = vmatmul.f32.vlgmr.msra.gmra.mxu3 %v645_v55  ;;  %v646_v62 = vsub.f32 %v620_v58, %v645_v55  ;;  %v973_v48 = vand.u32 4294901760, %v972_v43  ;;  %v979_v58 = vand.u32 4294901760, %v978_v50 }
 0x281   :  { %v614_v63 = vmul.f32 %v2689_v46, %v611_v30  ;;  %1134 = vmatpush.msra.mxu3 %v3000_v12  ;;  %v3034_v46 = vand.u32 4294901760, %v55_v41  ;;  %v3061_v30 = vand.u32 4294901760, %v53_v57 }
 0x282   :  { %733 = vmatmul.f32.vlgmr.msrb.gmra.mxu0 %v646_v62  ;;  %v647_v2 = vand.u32 4294901760, %v646_v62  ;;  %974 = vmatpush.msra.mxu1 %v973_v48 }
 0x283   :  { %v2993_v3 = vadd.f32 %v2690_v51, %v614_v63  ;;  %1136 = vmatpush.msra.mxu3 %v3008_v26  ;;  %v3781_v51 = vand.u32 4294901760, %v3032_v45  ;;  %v3047_v52 = vsub.f32 %v55_v41, %v3034_v46  ;;  %927 = vmatpush.msra.mxu0 %v3034_v46  ;;  %v3070_v63 = vsub.f32 %v54_v47, %v3051_v54  ;;  %v50_v47 = vld [vmem:[%s3775_s5 + $0x38] sm:$0xff] }
 0x284   :  { %765 = vmatmul.f32.vlgmr.msrb.gmra.mxu1 %v647_v2  ;;  %v648_v1 = vsub.f32 %v646_v62, %v647_v2  ;;  %v3067_v62 = vld [vmem:[%s3774_s4 + $0x20] ss:$0 sm:$0xff]  ;;  %v52_v2 = vld [vmem:[%s3775_s5 + $0x48] sm:$0xff] }
 0x285   :  { %v623_v4 = vsel %vm338_vm1, %v2993_v3, 0  ;;  %1138 = vmatpush.msra.mxu3 %v3019_v36  ;;  %v984_v61 = vsub.f32 %v3032_v45, %v3781_v51  ;;  %929 = vmatpush.msra.mxu0 %v3051_v54 }
 0x286   :  { %v649_v6 = vand.u32 4294901760, %v648_v1  ;;  %v653_v7 = vand.u32 4294901760, %v623_v4  ;;  %980 = vmatpush.msra.mxu1 %v979_v58  ;;  %v3114_v58 = vand.u32 4294901760, %v50_v47 }
 0x287   :  { %1140 = vmatpush.msra.mxu3 %v3034_v46  ;;  %931 = vmatpush.msra.mxu0 %v3061_v30 }
 0x288   :  { %650 = vmatmul.f32.vlgmr.msra.gmra.mxu2 %v649_v6  ;;  %703 = vmatmul.f32.gmra.mxu3 %v653_v7  ;;  %v654_v8 = vsub.f32 %v623_v4, %v653_v7  ;;  %v985_v4 = vand.u32 4294901760, %v984_v61 }
 0x289   :  { %1076 = vmatpush.msra.mxu2 %v3006_v20  ;;  %1142 = vmatpush.msra.mxu3 %v3051_v54 }
 0x28a   :  { %738 = vmatmul.f32.gmra.mxu0 %v654_v8  ;;  %v655_v10 = vand.u32 4294901760, %v654_v8  ;;  %986 = vmatpush.msra.mxu1 %v985_v4 }
 0x28b   :  { %1079 = vmatpush.msra.mxu2 %v3017_v32  ;;  %1144 = vmatpush.msra.mxu3 %v3061_v30 }
 0x28c   :  { %771 = vmatmul.f32.gmra.mxu1 %v655_v10  ;;  %v656_v42 = vsub.f32 %v654_v8, %v655_v10  ;;  %v3083_v8 = vand.u32 4294901760, %v52_v2  ;;  %v3778_v10 = vand.u32 4294901760, %v3070_v63 }
 0x28d   :  { %1082 = vmatpush.msra.mxu2 %v3032_v45 }
 0x28e   :  { %v657_v0 = vand.u32 4294901760, %v656_v42  ;;  %v51_v42 = vld [vmem:[%s3775_s5 + $0x40] sm:$0xff]  ;;  %v3093_v19 = vsub.f32 %v52_v2, %v3083_v8  ;;  %v996_v43 = vsub.f32 %v3070_v63, %v3778_v10  ;;  %933 = vmatpush.msra.mxu0 %v3083_v8  ;;  %1146 = vmatpush.msra.mxu3 %v3083_v8  ;;  %v49_v2 = vld [vmem:[%s3775_s5 + $0x30] sm:$0xff] }
 0x28f   :  { %1085 = vmatpush.msra.mxu2 %v3047_v52  ;;  %v3095_v28 = vand.u32 4294901760, %v51_v42 }
 0x290   :  { %658 = vmatmul.f32.gmra.mxu2 %v657_v0  ;;  %833 = vmatmul.f32.vlgmr.msrb.gmra.mxu3 %v645_v55  ;;  %v3779_v50 = vand.u32 4294901760, %v3093_v19  ;;  %v997_v61 = vand.u32 4294901760, %v996_v43 }
 0x291   :  { %1088 = vmatpush.msra.mxu2 %v3070_v63  ;;  %935 = vmatpush.msra.mxu0 %v3095_v28 }
 0x292   :  { %v1008_v4 = vsub.f32 %v3093_v19, %v3779_v50  ;;  %1148 = vmatpush.msra.mxu3 %v3095_v28 }
 0x293   :  { %937 = vmatpush.msra.mxu0 %v3114_v58 }
 0x294   :  { %1150 = vmatpush.msra.mxu3 %v3114_v58 }
 0x298   :  { %804 = vmatmul.f32.vlgmr.msrb.gmra.mxu2 %v645_v55  ;;  %837 = vmatmul.f32.gmra.mxu3 %v653_v7  ;;  %v3780_v55 = vand.u32 4294901760, %v3047_v52 }
 0x29a   :  { %v990_v6 = vsub.f32 %v3047_v52, %v3780_v55  ;;  %v1009_v55 = vand.u32 4294901760, %v1008_v4 }
 0x29c   :  { %v991_v0 = vand.u32 4294901760, %v990_v6 }
 0x29e   :  { %992 = vmatpush.msra.mxu1 %v991_v0 }
 0x2a0   :  { %808 = vmatmul.f32.gmra.mxu2 %v653_v7  ;;  %v3081_v7 = vsub.f32 %v53_v57, %v3061_v30  ;;  %v3112_v57 = vsub.f32 %v51_v42, %v3095_v28  ;;  %v3127_v42 = vsub.f32 %v50_v47, %v3114_v58  ;;  %998 = vmatpush.msra.mxu1 %v997_v61  ;;  %v47_v61 = vld [vmem:[%s3775_s5 + $0x20] sm:$0xff] }
 0x2a1   :  { %v3157_v31 = vand.u32 4294901760, %v47_v61 }
 0x2a2   :  { %v3777_v11 = vand.u32 4294901760, %v3081_v7  ;;  %1091 = vmatpush.msra.mxu2 %v3081_v7  ;;  %v3782_v6 = vand.u32 4294901760, %v3112_v57  ;;  %v3787_v51 = vand.u32 4294901760, %v3127_v42 }
 0x2a3   :  { %v3169_v14 = vsub.f32 %v47_v61, %v3157_v31 }
 0x2a4   :  { %v1002_v48 = vsub.f32 %v3081_v7, %v3777_v11  ;;  %1094 = vmatpush.msra.mxu2 %v3093_v19  ;;  %v3130_v11 = vand.u32 4294901760, %v49_v2  ;;  %v1014_v47 = vsub.f32 %v3112_v57, %v3782_v6  ;;  %v1020_v6 = vsub.f32 %v3127_v42, %v3787_v51 }
 0x2a6   :  { %1097 = vmatpush.msra.mxu2 %v3112_v57  ;;  %939 = vmatpush.msra.mxu0 %v3130_v11  ;;  %v1015_v4 = vand.u32 4294901760, %v1014_v47  ;;  %v46_v47 = vld [vmem:[%s3775_s5 + $0x18] sm:$0xff]  ;;  %v1021_v51 = vand.u32 4294901760, %v1020_v6 }
 0x2a7   :  { %1152 = vmatpush.msra.mxu3 %v3130_v11  ;;  %v3171_v40 = vand.u32 4294901760, %v46_v47 }
 0x2a8   :  { %1100 = vmatpush.msra.mxu2 %v3127_v42 }
 0x2a9   :  { %v3187_v6 = vsub.f32 %v46_v47, %v3171_v40  ;;  %v3817_v47 = vand.u32 4294901760, %v3169_v14 }
 0x2ab   :  { %v1038_v49 = vsub.f32 %v3169_v14, %v3817_v47  ;;  %v3798_v59 = vand.u32 4294901760, %v3187_v6 }
 0x2ff   :  { %v734_v10 = vpop.f32.mrf.mxu0 }
 0x303   :  { %v700_v53 = vpop.f32.mrf.mxu3 }
 0x30b   :  { %v651_v1 = vpop.f32.mrf.mxu2  ;;  %v704_v43 = vpop.f32.mrf.mxu3 }
 0x30c   :  { %v652_v41 = vadd.f32 %v3067_v62, %v651_v1  ;;  %v1003_v1 = vand.u32 4294901760, %v1002_v48  ;;  %v48_v48 = vld [vmem:[%s3775_s5 + $0x28] sm:$0xff] }
 0x30e   :  { %v701_v0 = vadd.f32 %v700_v53, %v652_v41  ;;  %v3140_v53 = vand.u32 4294901760, %v48_v48  ;;  %1004 = vmatpush.msra.mxu1 %v1003_v1  ;;  %v3145_v41 = vsub.f32 %v49_v2, %v3130_v11 }
 0x310   :  { %v3155_v44 = vsub.f32 %v48_v48, %v3140_v53  ;;  %v735_v1 = vadd.f32 %v734_v10, %v701_v0  ;;  %1010 = vmatpush.msra.mxu1 %v1009_v55  ;;  %v3792_v60 = vand.u32 4294901760, %v3145_v41  ;;  %941 = vmatpush.msra.mxu0 %v3140_v53  ;;  %v766_v48 = vpop.f32.mrf.mxu1 }
 0x311   :  { %1103 = vmatpush.msra.mxu2 %v3145_v41  ;;  %1154 = vmatpush.msra.mxu3 %v3140_v53 }
 0x312   :  { %v3794_v5 = vand.u32 4294901760, %v3155_v44  ;;  %1016 = vmatpush.msra.mxu1 %v1015_v4  ;;  %v1026_v55 = vsub.f32 %v3145_v41, %v3792_v60  ;;  %943 = vmatpush.msra.mxu0 %v3157_v31  ;;  %v767_v4 = vadd.f32 %v766_v48, %v735_v1  ;;  %v43_v1 = vld [vmem:[%s3775_s5] sm:$0xff]  ;;  %v739_v48 = vpop.f32.mrf.mxu0 }
 0x313   :  { %v659_v50 = vpop.f32.mrf.mxu2  ;;  %1106 = vmatpush.msra.mxu2 %v3155_v44  ;;  %1156 = vmatpush.msra.mxu3 %v3157_v31  ;;  %v3216_v47 = vand.u32 4294901760, %v43_v1 }
 0x314   :  { %v660_v2 = vadd.f32 %v3067_v62, %v659_v50  ;;  %v45_v62 = vld [vmem:[%s3775_s5 + $0x10] sm:$0xff]  ;;  %v1032_v10 = vsub.f32 %v3155_v44, %v3794_v5  ;;  %1022 = vmatpush.msra.mxu1 %v1021_v51  ;;  %v1027_v60 = vand.u32 4294901760, %v1026_v55  ;;  %945 = vmatpush.msra.mxu0 %v3171_v40  ;;  %v834_v51 = vpop.f32.mrf.mxu3  ;;  %v1039_v55 = vand.u32 4294901760, %v1038_v49 }
 0x315   :  { %v3189_v0 = vand.u32 4294901760, %v45_v62  ;;  %1109 = vmatpush.msra.mxu2 %v3169_v14  ;;  %1158 = vmatpush.msra.mxu3 %v3171_v40  ;;  %v3230_v15 = vsub.f32 %v43_v1, %v3216_v47 }
 0x316   :  { %v705_v61 = vadd.f32 %v704_v43, %v660_v2  ;;  %v1033_v50 = vand.u32 4294901760, %v1032_v10  ;;  %1028 = vmatpush.msra.mxu1 %v1027_v60  ;;  %v3206_v2 = vand.u32 4294901760, %v44_v37 }
 0x317   :  { %v3202_v13 = vsub.f32 %v45_v62, %v3189_v0  ;;  %947 = vmatpush.msra.mxu0 %v3189_v0  ;;  %v1044_v62 = vsub.f32 %v3187_v6, %v3798_v59  ;;  %1112 = vmatpush.msra.mxu2 %v3187_v6 }
 0x318   :  { %1160 = vmatpush.msra.mxu3 %v3189_v0  ;;  %1034 = vmatpush.msra.mxu1 %v1033_v50  ;;  %v772_v50 = vpop.f32.mrf.mxu1 }
 0x319   :  { %v3801_v10 = vand.u32 4294901760, %v3202_v13  ;;  %949 = vmatpush.msra.mxu0 %v3206_v2  ;;  %v1045_v49 = vand.u32 4294901760, %v1044_v62  ;;  %1115 = vmatpush.msra.mxu2 %v3202_v13 }
 0x31a   :  { %1162 = vmatpush.msra.mxu3 %v3206_v2  ;;  %1040 = vmatpush.msra.mxu1 %v1039_v55 }
 0x31b   :  { %v805_v5 = vpop.f32.mrf.mxu2  ;;  %v1050_v59 = vsub.f32 %v3202_v13, %v3801_v10  ;;  %951 = vmatpush.msra.mxu0 %v3216_v47 }
 0x31c   :  { %v806_v43 = vadd.f32 %v805_v5, %v767_v4  ;;  %v740_v5 = vadd.f32 %v739_v48, %v705_v61  ;;  %v3223_v4 = vsub.f32 %v44_v37, %v3206_v2  ;;  %v3818_v48 = vand.u32 4294901760, %v3006_v20  ;;  %1046 = vmatpush.msra.mxu1 %v1045_v49  ;;  %1164 = vmatpush.msra.mxu3 %v3216_v47 }
 0x31d   :  { %v3819_v20 = vand.u32 4294901760, %v3017_v32 }
 0x31e   :  { %v3220_v60 = vadd.f32 %v834_v51, %v806_v43  ;;  %v3803_v37 = vand.u32 4294901760, %v3223_v4  ;;  %v1051_v51 = vand.u32 4294901760, %v1050_v59  ;;  %v3805_v43 = vand.u32 4294901760, %v3230_v15  ;;  %1181 = vmatpush.msrb.mxu0 %v3818_v48  ;;  %1118 = vmatpush.msra.mxu2 %v3223_v4 }
 0x31f   :  { %v773_v62 = vadd.f32 %v772_v50, %v740_v5  ;;  %v3820_v50 = vand.u32 4294901760, %v3032_v45 }
 0x320   :  { %v3235_v61 = vand.u32 2147483647, %v3220_v60  ;;  %v1056_v55 = vsub.f32 %v3223_v4, %v3803_v37  ;;  %v1062_v59 = vsub.f32 %v3230_v15, %v3805_v43  ;;  %1185 = vmatpush.msrb.mxu0 %v3819_v20  ;;  %1121 = vmatpush.msra.mxu2 %v3230_v15  ;;  %v838_v37 = vpop.f32.mrf.mxu3  ;;  %v3821_v43 = vand.u32 4294901760, %v3047_v52 }
 0x321   :  { %1052 = vmatpush.msra.mxu1 %v1051_v51  ;;  %v3823_v51 = vand.u32 4294901760, %v3081_v7  ;;  %vm841_vm2 = vcmp.ge.f32.partialorder %v3220_v60, 0.0 }
 0x322   :  { %v847_v1 = vmul.f32 0.23164189, %v3235_v61  ;;  %v1057_v5 = vand.u32 4294901760, %v1056_v55  ;;  %v1063_v49 = vand.u32 4294901760, %v1062_v59  ;;  %1189 = vmatpush.msrb.mxu0 %v3820_v50  ;;  %v3828_v59 = vand.u32 4294901760, %v3155_v44 }
 0x323   :  { %v809_v10 = vpop.f32.mrf.mxu2 }
 0x324   :  { %v849_v48 = vadd.f32 1.0, %v847_v1  ;;  %v810_v29 = vadd.f32 %v809_v10, %v773_v62  ;;  %1058 = vmatpush.msra.mxu1 %v1057_v5  ;;  %1193 = vmatpush.msrb.mxu0 %v3821_v43  ;;  %v3822_v10 = vand.u32 4294901760, %v3070_v63  ;;  %v3824_v43 = vand.u32 4294901760, %v3093_v19 }
 0x325   :  { %v3826_v62 = vand.u32 4294901760, %v3127_v42  ;;  %v3827_v19 = vand.u32 4294901760, %v3145_v41  ;;  %v899_v42 = vmul.f32 -0.5, %v3235_v61 }
 0x326   :  { %2707 = vrcp.f32 %v849_v48  ;;  %v3256_v21 = vadd.f32 %v838_v37, %v810_v29  ;;  %1064 = vmatpush.msra.mxu1 %v1063_v49  ;;  %1197 = vmatpush.msrb.mxu0 %v3822_v10  ;;  %v862_v63 = vand.u32 2147483648, %v849_v48  ;;  %v860_v7 = vand.u32 2147483647, %v849_v48 }
 0x327   :  { %vm856_vm10 = vweird.f32 %v849_v48  ;;  %v901_v44 = vmul.f32 %v899_v42, %v3235_v61 }
 0x328   :  { %v3261_v32 = vand.u32 2147483647, %v3256_v21  ;;  %1252 = vmatpush.msrb.mxu1 %v3000_v12  ;;  %1201 = vmatpush.msrb.mxu0 %v3823_v51  ;;  %v3825_v12 = vand.u32 4294901760, %v3112_v57  ;;  %vm861_vm12 = vcmp.eq.f32.partialorder %v860_v7, 8.507059e+37  ;;  %vm842_vm3 = vcmp.ge.f32.partialorder %v3256_v21, 0.0 }
 0x32a   :  { %v848_v45 = vmul.f32 0.23164189, %v3261_v32  ;;  %1254 = vmatpush.msrb.mxu1 %v3008_v26  ;;  %1205 = vmatpush.msrb.mxu0 %v3824_v43 }
 0x32c   :  { %v2708_v29 = vpop.eup %2707  ;;  %v850_v52 = vadd.f32 1.0, %v848_v45  ;;  %1256 = vmatpush.msrb.mxu1 %v3019_v36  ;;  %1209 = vmatpush.msrb.mxu0 %v3825_v12 }
 0x32d   :  { %v852_v37 = vmul.f32 %v2708_v29, %v849_v48  ;;  %vm857_vm9 = vweird.f32 %v2708_v29 }
 0x32e   :  { %2709 = vrcp.f32 %v850_v52  ;;  %1258 = vmatpush.msrb.mxu1 %v3034_v46  ;;  %1213 = vmatpush.msrb.mxu0 %v3826_v62  ;;  %vm858_vm11 = vmor %vm856_vm10, %vm857_vm9  ;;  %v863_v46 = vor.u32 1.1754944e-38, %v862_v63  ;;  %v877_v49 = vand.u32 2147483648, %v850_v52  ;;  %v875_v10 = vand.u32 2147483647, %v850_v52 }
 0x32f   :  { %v853_v1 = vsub.f32 1.0, %v852_v37  ;;  %vm871_vm14 = vweird.f32 %v850_v52 }
 0x330   :  { %1260 = vmatpush.msrb.mxu1 %v3051_v54  ;;  %1217 = vmatpush.msrb.mxu0 %v3827_v19  ;;  %vm876_vm0 = vcmp.eq.f32.partialorder %v875_v10, 8.507059e+37 }
 0x331   :  { %v854_v26 = vmul.f32 %v2708_v29, %v853_v1 }
 0x332   :  { %1262 = vmatpush.msrb.mxu1 %v3061_v30  ;;  %1221 = vmatpush.msrb.mxu0 %v3828_v59  ;;  %v3829_v30 = vand.u32 4294901760, %v3169_v14 }
 0x333   :  { %v855_v36 = vadd.f32 %v2708_v29, %v854_v26 }
 0x334   :  { %v2710_v57 = vpop.eup %2709  ;;  %1264 = vmatpush.msrb.mxu1 %v3083_v8  ;;  %1225 = vmatpush.msrb.mxu0 %v3829_v30  ;;  %v3830_v8 = vand.u32 4294901760, %v3187_v6  ;;  %v903_v6 = vmul.f32 1.442695, %v901_v44 }
 0x335   :  { %v859_v55 = vsel %vm858_vm11, %v2708_v29, %v855_v36  ;;  %v867_v20 = vmul.f32 %v2710_v57, %v850_v52  ;;  %vm872_vm13 = vweird.f32 %v2710_v57  ;;  %v878_v29 = vor.u32 1.1754944e-38, %v877_v49 }
 0x336   :  { %v864_v54 = vsel %vm861_vm12, %v863_v46, %v859_v55  ;;  %1266 = vmatpush.msrb.mxu1 %v3095_v28  ;;  %1229 = vmatpush.msrb.mxu0 %v3830_v8  ;;  %v3831_v28 = vand.u32 4294901760, %v3202_v13  ;;  %vm873_vm15 = vmor %vm871_vm14, %vm872_vm13  ;;  %v3833_v13 = vand.u32 4294901760, %v3230_v15  ;;  %2711 = vpow2.f32 %v903_v6 }
 0x337   :  { %v881_v48 = vmul.f32 1.0614054, %v864_v54  ;;  %v868_v41 = vsub.f32 1.0, %v867_v20 }
 0x338   :  { %1268 = vmatpush.msrb.mxu1 %v3114_v58  ;;  %1233 = vmatpush.msrb.mxu0 %v3831_v28  ;;  %v3832_v58 = vand.u32 4294901760, %v3223_v4 }
 0x339   :  { %v883_v5 = vadd.f32 -1.4531521, %v881_v48  ;;  %v869_v50 = vmul.f32 %v2710_v57, %v868_v41 }
 0x33a   :  { %1270 = vmatpush.msrb.mxu1 %v3130_v11  ;;  %1237 = vmatpush.msrb.mxu0 %v3832_v58  ;;  %v900_v11 = vmul.f32 -0.5, %v3261_v32 }
 0x33b   :  { %v885_v45 = vmul.f32 %v883_v5, %v864_v54  ;;  %v870_v14 = vadd.f32 %v2710_v57, %v869_v50  ;;  %v914_v50 = vmul.f32 0.5, %v3256_v21 }
 0x33c   :  { %1272 = vmatpush.msrb.mxu1 %v3140_v53  ;;  %1241 = vmatpush.msrb.mxu0 %v3833_v13  ;;  %v902_v12 = vmul.f32 %v900_v11, %v3261_v32  ;;  %v2712_v15 = vpop.eup %2711  ;;  %v2762_v32 = vmov -1.0   ;;  %v2692_v13 = vld [vmem:[%s3775_s5 + $0x80] ss:$0 sm:$0xff] }
 0x33d   :  { %v887_v51 = vadd.f32 1.4214138, %v885_v45  ;;  %v874_v61 = vsel %vm873_vm15, %v2710_v57, %v870_v14  ;;  %v844_v5 = vsel %vm842_vm3, 1.0, %v2762_v32 }
 0x33e   :  { %v879_v43 = vsel %vm876_vm0, %v878_v29, %v874_v61  ;;  %1274 = vmatpush.msrb.mxu1 %v3157_v31  ;;  %v905_v62 = vmul.f32 1.442695, %v902_v12 }
 0x33f   :  { %v889_v37 = vmul.f32 %v887_v51, %v864_v54  ;;  %v882_v52 = vmul.f32 1.0614054, %v879_v43 }
 0x340   :  { %1276 = vmatpush.msrb.mxu1 %v3171_v40  ;;  %2713 = vpow2.f32 %v905_v62 }
 0x341   :  { %v891_v1 = vadd.f32 -0.28449672, %v889_v37  ;;  %v884_v53 = vadd.f32 -1.4531521, %v882_v52 }
 0x342   :  { %1278 = vmatpush.msrb.mxu1 %v3189_v0  ;;  %v843_v0 = vsel %vm841_vm2, 1.0, %v2762_v32 }
 0x343   :  { %v893_v4 = vmul.f32 %v891_v1, %v864_v54  ;;  %v886_v63 = vmul.f32 %v884_v53, %v879_v43 }
 0x344   :  { %1280 = vmatpush.msrb.mxu1 %v3206_v2  ;;  %v913_v2 = vmul.f32 0.5, %v3220_v60 }
 0x345   :  { %v895_v26 = vadd.f32 0.2548296, %v893_v4  ;;  %v888_v7 = vadd.f32 1.4214138, %v886_v63 }
 0x346   :  { %1282 = vmatpush.msrb.mxu1 %v3216_v47  ;;  %v2714_v20 = vpop.eup %2713 }
 0x347   :  { %v897_v31 = vmul.f32 %v895_v26, %v864_v54  ;;  %v890_v36 = vmul.f32 %v888_v7, %v879_v43 }
 0x349   :  { %v907_v40 = vmul.f32 %v2712_v15, %v897_v31  ;;  %v892_v19 = vadd.f32 -0.28449672, %v890_v36 }
 0x34b   :  { %v909_v46 = vsub.f32 1.0, %v907_v40  ;;  %v894_v57 = vmul.f32 %v892_v19, %v879_v43 }
 0x34d   :  { %v911_v55 = vmul.f32 %v909_v46, %v843_v0  ;;  %v896_v59 = vadd.f32 0.2548296, %v894_v57 }
 0x34f   :  { %v915_v54 = vadd.f32 1.0, %v911_v55  ;;  %v898_v42 = vmul.f32 %v896_v59, %v879_v43 }
 0x351   :  { %v917_v47 = vmul.f32 %v915_v54, %v913_v2  ;;  %v908_v48 = vmul.f32 %v2714_v20, %v898_v42 }
 0x353   :  { %v952_v30 = vand.u32 4294901760, %v917_v47  ;;  %v910_v41 = vsub.f32 1.0, %v908_v48 }
 0x355   :  { %1066 = vmatmul.f32.vlgmr.msra.gmra.mxu1 %v952_v30  ;;  %v953_v49 = vsub.f32 %v917_v47, %v952_v30  ;;  %v912_v8 = vmul.f32 %v910_v41, %v844_v5 }
 0x357   :  { %1124 = vmatmul.f32.vlgmr.msra.gmra.mxu2 %v953_v49  ;;  %v954_v44 = vand.u32 4294901760, %v953_v49  ;;  %v916_v10 = vadd.f32 1.0, %v912_v8 }
 0x359   :  { %1168 = vmatmul.f32.vlgmr.msra.gmra.mxu3 %v954_v44  ;;  %v955_v60 = vsub.f32 %v953_v49, %v954_v44  ;;  %v918_v45 = vmul.f32 %v916_v10, %v914_v50 }
 0x35b   :  { %v956_v28 = vand.u32 4294901760, %v955_v60  ;;  %v960_v14 = vand.u32 4294901760, %v918_v45 }
 0x35d   :  { %957 = vmatmul.f32.vlgmr.msra.gmra.mxu0 %v956_v28  ;;  %1070 = vmatmul.f32.gmra.mxu1 %v960_v14  ;;  %v961_v51 = vsub.f32 %v918_v45, %v960_v14 }
 0x35f   :  { %1129 = vmatmul.f32.gmra.mxu2 %v961_v51  ;;  %v962_v29 = vand.u32 4294901760, %v961_v51 }
 0x361   :  { %1174 = vmatmul.f32.gmra.mxu3 %v962_v29  ;;  %v963_v58 = vsub.f32 %v961_v51, %v962_v29 }
 0x363   :  { %v964_v6 = vand.u32 4294901760, %v963_v58 }
 0x365   :  { %965 = vmatmul.f32.gmra.mxu0 %v964_v6  ;;  %1284 = vmatmul.f32.vlgmr.msrb.gmra.mxu1 %v952_v30 }
 0x36d   :  { %1243 = vmatmul.f32.vlgmr.msrb.gmra.mxu0 %v952_v30  ;;  %1288 = vmatmul.f32.gmra.mxu1 %v960_v14 }
 0x375   :  { %1247 = vmatmul.f32.gmra.mxu0 %v960_v14 }
 0x3d2   :  { %v1067_v21 = vpop.f32.mrf.mxu1 }
 0x3da   :  { %v958_v61 = vpop.f32.mrf.mxu0  ;;  %v1071_v37 = vpop.f32.mrf.mxu1 }
 0x3db   :  { %v1125_v43 = vpop.f32.mrf.mxu2  ;;  %v959_v53 = vadd.f32 %v2692_v13, %v958_v61 }
 0x3dc   :  { %v1169_v1 = vpop.f32.mrf.mxu3 }
 0x3dd   :  { %v1068_v26 = vadd.f32 %v1067_v21, %v959_v53  ;;  %v2694_v53 = vld [vmem:[%s3773_s3 + $0x13] ss:$0 sm:$0xff] }
 0x3df   :  { %v1126_v62 = vadd.f32 %v1125_v43, %v1068_v26 }
 0x3e1   :  { %v1170_v19 = vadd.f32 %v1169_v1, %v1126_v62 }
 0x3e2   :  { %v966_v11 = vpop.f32.mrf.mxu0  ;;  %v1285_v12 = vpop.f32.mrf.mxu1 }
 0x3e3   :  { %v967_v52 = vadd.f32 %v2692_v13, %v966_v11  ;;  %v1130_v7 = vpop.f32.mrf.mxu2  ;;  %v2693_v11 = vld [vmem:[%s3773_s3 + $0x12] ss:$0 sm:$0xff] }
 0x3e4   :  { %v1175_v15 = vpop.f32.mrf.mxu3 }
 0x3e5   :  { %v1072_v4 = vadd.f32 %v1071_v37, %v967_v52 }
 0x3e7   :  { %v1131_v31 = vadd.f32 %v1130_v7, %v1072_v4 }
 0x3e9   :  { %v1176_v36 = vadd.f32 %v1175_v15, %v1131_v31 }
 0x3ea   :  { %v1244_v63 = vpop.f32.mrf.mxu0  ;;  %v1289_v0 = vpop.f32.mrf.mxu1 }
 0x3eb   :  { %v1245_v57 = vadd.f32 %v1244_v63, %v1170_v19 }
 0x3ed   :  { %v1286_v2 = vadd.f32 %v1285_v12, %v1245_v57 }
 0x3ef   :  { %v1292_v42 = vadd.f32 %v1286_v2, %v2988_v56 }
 0x3f1   :  { %v1294_v20 = vsel %vm338_vm1, %v1292_v42, 0.0 }
 0x3f2   :  { %v1248_v40 = vpop.f32.mrf.mxu0 }
 0x3f3   :  { %v1249_v46 = vadd.f32 %v1248_v40, %v1176_v36 }
 0x3f5   :  { %v1290_v55 = vadd.f32 %v1289_v0, %v1249_v46 }
 0x3f7   :  { %v1293_v59 = vadd.f32 %v1290_v55, %v2993_v3 }
 0x3f9   :  { %v1297_v54 = vsel %vm338_vm1, %v1293_v59, 0.0 }
 0x3fa   :  { %1298 = vadd.xlane.f32.xlu2 %v1297_v54 }
 0x402   :  { %1295 = vadd.xlane.f32.xlu2 %v1294_v20 }
 0x46d   :  { %v1299_v47 = vpop.xlane.xlu2 %1298 }
 0x46e   :  { %v1301_v48 = vmul.f32 %v1299_v47, %v2953_v25 }
 0x470   :  { %v1303_v30 = vsub.f32 %v1293_v59, %v1301_v48 }
 0x472   :  { %v1305_v41 = vmul.f32 %v1303_v30, %v1303_v30 }
 0x474   :  { %v1309_v5 = vsel %vm338_vm1, %v1305_v41, 0.0 }
 0x475   :  { %1310 = vadd.xlane.f32.xlu0 %v1309_v5  ;;  %v1296_v49 = vpop.xlane.xlu2 %1295 }
 0x476   :  { %v1300_v3 = vmul.f32 %v1296_v49, %v2953_v25 }
 0x478   :  { %v1302_v8 = vsub.f32 %v1292_v42, %v1300_v3 }
 0x47a   :  { %v1304_v44 = vmul.f32 %v1302_v8, %v1302_v8 }
 0x47c   :  { %v1306_v50 = vsel %vm338_vm1, %v1304_v44, 0.0 }
 0x47d   :  { %1307 = vadd.xlane.f32.xlu1 %v1306_v50 }
 0x4e8   :  { %v1311_v56 = vpop.xlane.xlu0 %1310 }
 0x4e9   :  { %v1313_v10 = vmul.f32 %v1311_v56, %v2953_v25 }
 0x4eb   :  { %v1315_v60 = vadd.f32 1e-12, %v1313_v10 }
 0x4ed   :  { %2715 = vrsqrt.f32 %v1315_v60  ;;  %vm1332_vm5 = vweird.f32 %v1315_v60 }
 0x4f0   :  { %v1308_v45 = vpop.xlane.xlu1 %1307 }
 0x4f1   :  { %v1312_v28 = vmul.f32 %v1308_v45, %v2953_v25 }
 0x4f3   :  { %v2716_v14 = vpop.eup %2715  ;;  %v1314_v51 = vadd.f32 1e-12, %v1312_v28 }
 0x4f4   :  { %v1327_v29 = vmul.f32 %v2716_v14, %v1315_v60  ;;  %vm1333_vm4 = vweird.f32 %v2716_v14 }
 0x4f5   :  { %2717 = vrsqrt.f32 %v1314_v51  ;;  %vm1334_vm6 = vmor %vm1332_vm5, %vm1333_vm4  ;;  %vm1322_vm8 = vweird.f32 %v1314_v51 }
 0x4f6   :  { %v1328_v58 = vmul.f32 %v2716_v14, %v1327_v29 }
 0x4f8   :  { %v1329_v6 = vmul.f32 0.5, %v1328_v58 }
 0x4fa   :  { %v1330_v21 = vsub.f32 1.5, %v1329_v6 }
 0x4fb   :  { %v2718_v61 = vpop.eup %2717 }
 0x4fc   :  { %v1331_v37 = vmul.f32 %v2716_v14, %v1330_v21  ;;  %v1317_v43 = vmul.f32 %v2718_v61, %v1314_v51  ;;  %vm1323_vm7 = vweird.f32 %v2718_v61 }
 0x4fd   :  { %vm1324_vm9 = vmor %vm1322_vm8, %vm1323_vm7 }
 0x4fe   :  { %v1335_v13 = vsel %vm1334_vm6, %v2716_v14, %v1331_v37  ;;  %v1318_v52 = vmul.f32 %v2718_v61, %v1317_v43 }
 0x4ff   :  { %v1337_v1 = vmul.f32 %v1335_v13, %v1303_v30 }
 0x500   :  { %v1319_v4 = vmul.f32 0.5, %v1318_v52 }
 0x501   :  { %v1340_v12 = vmul.f32 %v2693_v11, %v1337_v1  ;;  %v2652_v1 = vld [vmem:[%s3773_s3 + $0x18] sm:$0xff] }
 0x502   :  { %v1320_v63 = vsub.f32 1.5, %v1319_v4 }
 0x503   :  { %v3333_v26 = vadd.f32 %v2694_v53, %v1340_v12 }
 0x504   :  { %v1321_v7 = vmul.f32 %v2718_v61, %v1320_v63 }
 0x505   :  { %v1390_v31 = vand.u32 4294901760, %v3333_v26 }
 0x506   :  { %v1325_v62 = vsel %vm1324_vm9, %v2718_v61, %v1321_v7  ;;  %v2653_v61 = vld [vmem:[%s3773_s3 + $0x20] sm:$0xff] }
 0x507   :  { %v1336_v15 = vmul.f32 %v1325_v62, %v1302_v8  ;;  %1391 = vmatpush.msrb.mxu2 %v1390_v31  ;;  %1526 = vmatpush.msra.mxu1 %v1390_v31  ;;  %v1442_v36 = vsub.f32 %v3333_v26, %v1390_v31 }
 0x509   :  { %v1339_v40 = vmul.f32 %v2693_v11, %v1336_v15  ;;  %1486 = vmatpush.msra.mxu0 %v1442_v36  ;;  %v1443_v19 = vand.u32 4294901760, %v1442_v36  ;;  %v1375_v11 = vsub.f32 0.0, %v2653_v61 }
 0x50b   :  { %v3337_v46 = vadd.f32 %v2694_v53, %v1339_v40  ;;  %v1444_v0 = vsub.f32 %v1442_v36, %v1443_v19 }
 0x50d   :  { %v1392_v57 = vand.u32 4294901760, %v3337_v46  ;;  %v1445_v55 = vand.u32 4294901760, %v1444_v0 }
 0x50f   :  { %1393 = vmatpush.msrb.mxu2 %v1392_v57  ;;  %1446 = vmatpush.msrb.mxu3 %v1445_v55  ;;  %v1448_v59 = vsub.f32 %v3337_v46, %v1392_v57 }
 0x510   :  { %1528 = vmatpush.msra.mxu1 %v1392_v57  ;;  %1399 = vmatmul.f32.vlgmr.msrb.gmra.mxu2 %v2865_v35 }
 0x511   :  { %1571 = vmatpush.msra.mxu2 %v1443_v19  ;;  %1489 = vmatpush.msra.mxu0 %v1448_v59  ;;  %v1449_v2 = vand.u32 4294901760, %v1448_v59 }
 0x512   :  { %1492 = vmatmul.f32.vlgmr.msra.gmra.mxu0 %v2842_v22  ;;  %1532 = vmatmul.f32.vlgmr.msra.gmra.mxu1 %v2851_v27  ;;  %v3834_v22 = vld [vmem:[#allocation6_spill] sm:$0xff]  ;;  %v3835_v27 = vld [vmem:[#allocation7_spill] sm:$0xff] }
 0x513   :  { %1575 = vmatpush.msra.mxu2 %v1449_v2  ;;  %v1450_v54 = vsub.f32 %v1448_v59, %v1449_v2 }
 0x515   :  { %v1451_v42 = vand.u32 4294901760, %v1450_v54 }
 0x517   :  { %1452 = vmatpush.msrb.mxu3 %v1451_v42 }
 0x518   :  { %1407 = vmatmul.f32.gmra.mxu2 %v2877_v39  ;;  %1454 = vmatmul.f32.vlgmr.msrb.gmra.mxu3 %v2831_v16 }
 0x519   :  { %1608 = vmatpush.msra.mxu3 %v1390_v31 }
 0x51a   :  { %1497 = vmatmul.f32.gmra.mxu0 %v2848_v24  ;;  %1538 = vmatmul.f32.gmra.mxu1 %v2863_v34  ;;  %v3836_v24 = vld [vmem:[#allocation5_spill] sm:$0xff] }
 0x51b   :  { %1610 = vmatpush.msra.mxu3 %v1392_v57 }
 0x520   :  { %1415 = vmatmul.f32.gmra.mxu2 %v2860_v33  ;;  %1458 = vmatmul.f32.gmra.mxu3 %v2836_v18 }
 0x522   :  { %1502 = vmatmul.f32.gmra.mxu0 %v2834_v17  ;;  %1544 = vmatmul.f32.gmra.mxu1 %v2845_v23 }
 0x528   :  { %1423 = vmatmul.f32.gmra.mxu2 %v2875_v38  ;;  %1462 = vmatmul.f32.gmra.mxu3 %v2825_v9 }
 0x52a   :  { %1507 = vmatmul.f32.gmra.mxu0 %v3834_v22  ;;  %1550 = vmatmul.f32.gmra.mxu1 %v3835_v27 }
 0x530   :  { %1466 = vmatmul.f32.gmra.mxu3 %v3836_v24  ;;  %1577 = vmatmul.f32.vlgmr.msra.gmra.mxu2 %v2831_v16 }
 0x538   :  { %1581 = vmatmul.f32.gmra.mxu2 %v2836_v18  ;;  %1612 = vmatmul.f32.vlgmr.msra.gmra.mxu3 %v2831_v16 }
 0x540   :  { %1585 = vmatmul.f32.gmra.mxu2 %v2825_v9  ;;  %1616 = vmatmul.f32.gmra.mxu3 %v2836_v18 }
 0x548   :  { %1589 = vmatmul.f32.gmra.mxu2 %v3836_v24  ;;  %1620 = vmatmul.f32.gmra.mxu3 %v2825_v9 }
 0x550   :  { %1624 = vmatmul.f32.gmra.mxu3 %v3836_v24 }
 0x58f   :  { %v1493_v38 = vpop.f32.mrf.mxu0  ;;  %v1533_v47 = vpop.f32.mrf.mxu1 }
 0x593   :  { %v1400_v17 = vpop.f32.mrf.mxu2 }
 0x597   :  { %v1498_v30 = vpop.f32.mrf.mxu0  ;;  %v1539_v41 = vpop.f32.mrf.mxu1 }
 0x59b   :  { %v1408_v23 = vpop.f32.mrf.mxu2  ;;  %v1455_v33 = vpop.f32.mrf.mxu3 }
 0x59c   :  { %v1456_v49 = vadd.f32 %v1455_v33, %v1400_v17 }
 0x59e   :  { %v1494_v8 = vadd.f32 %v1493_v38, %v1456_v49  ;;  %v3837_v49 = vld [vmem:[#allocation13_spill] sm:$0xff] }
 0x59f   :  { %v1503_v3 = vpop.f32.mrf.mxu0  ;;  %v1545_v44 = vpop.f32.mrf.mxu1 }
 0x5a0   :  { %v1534_v60 = vadd.f32 %v1533_v47, %v1494_v8  ;;  %v3838_v8 = vld [vmem:[#allocation10_spill] sm:$0xff] }
 0x5a3   :  { %v1416_v34 = vpop.f32.mrf.mxu2  ;;  %v1459_v35 = vpop.f32.mrf.mxu3 }
 0x5a4   :  { %v1460_v45 = vadd.f32 %v1459_v35, %v1408_v23 }
 0x5a6   :  { %v1499_v58 = vadd.f32 %v1498_v30, %v1460_v45  ;;  %v3842_v45 = vld [vmem:[#allocation14_spill] sm:$0xff] }
 0x5a7   :  { %v1508_v29 = vpop.f32.mrf.mxu0  ;;  %v1551_v52 = vpop.f32.mrf.mxu1 }
 0x5a8   :  { %v1540_v53 = vadd.f32 %v1539_v41, %v1499_v58 }
 0x5ab   :  { %v1424_v39 = vpop.f32.mrf.mxu2  ;;  %v1463_v20 = vpop.f32.mrf.mxu3 }
 0x5ac   :  { %v1464_v9 = vadd.f32 %v1463_v20, %v1416_v34 }
 0x5ae   :  { %v1504_v56 = vadd.f32 %v1503_v3, %v1464_v9 }
 0x5b0   :  { %v1546_v28 = vadd.f32 %v1545_v44, %v1504_v56 }
 0x5b3   :  { %v1467_v16 = vpop.f32.mrf.mxu3  ;;  %v1578_v48 = vpop.f32.mrf.mxu2 }
 0x5b4   :  { %v1468_v14 = vadd.f32 %v1467_v16, %v1424_v39  ;;  %v1579_v51 = vadd.f32 %v1578_v48, %v1534_v60  ;;  %v3841_v60 = vld [vmem:[#allocation8_spill] sm:$0xff] }
 0x5b6   :  { %v1509_v43 = vadd.f32 %v1508_v29, %v1468_v14  ;;  %v3844_v14 = vld [vmem:[#allocation11_spill] sm:$0xff] }
 0x5b8   :  { %v1552_v7 = vadd.f32 %v1551_v52, %v1509_v43 }
 0x5bb   :  { %v1582_v18 = vpop.f32.mrf.mxu2  ;;  %v1613_v5 = vpop.f32.mrf.mxu3 }
 0x5bc   :  { %v1614_v6 = vadd.f32 %v1613_v5, %v1579_v51  ;;  %v1583_v31 = vadd.f32 %v1582_v18, %v1540_v53 }
 0x5be   :  { %v1634_v4 = vmul.f32 %v2653_v61, %v1614_v6  ;;  %v1628_v36 = vmul.f32 %v2652_v1, %v1614_v6 }
 0x5c3   :  { %v1617_v50 = vpop.f32.mrf.mxu3  ;;  %v1586_v10 = vpop.f32.mrf.mxu2 }
 0x5c4   :  { %v1587_v21 = vadd.f32 %v1586_v10, %v1546_v28  ;;  %v1618_v40 = vadd.f32 %v1617_v50, %v1583_v31  ;;  %v3839_v50 = vld [vmem:[#allocation9_spill] sm:$0xff]  ;;  %v3840_v10 = vld [vmem:[#allocation15_spill] sm:$0xff]  ;;  %v3843_v28 = vld [vmem:[#allocation12_spill] sm:$0xff] }
 0x5c6   :  { %v1629_v2 = vmul.f32 %v2652_v1, %v1618_v40  ;;  %v1635_v54 = vmul.f32 %v2653_v61, %v1618_v40 }
 0x5cb   :  { %v1621_v37 = vpop.f32.mrf.mxu3  ;;  %v1590_v63 = vpop.f32.mrf.mxu2 }
 0x5cc   :  { %v1622_v13 = vadd.f32 %v1621_v37, %v1587_v21  ;;  %v1591_v19 = vadd.f32 %v1590_v63, %v1552_v7 }
 0x5ce   :  { %v1630_v12 = vmul.f32 %v2652_v1, %v1622_v13  ;;  %v1632_v62 = vmul.f32 %v1622_v13, %v1375_v11 }
 0x5d0   :  { %v1638_v15 = vadd.f32 %v1634_v4, %v1630_v12  ;;  %v1636_v57 = vadd.f32 %v1632_v62, %v1628_v36 }
 0x5d2   :  { %v1654_v55 = vand.u32 4294901760, %v1638_v15  ;;  %v1658_v27 = vand.u32 4294901760, %v1636_v57 }
 0x5d3   :  { %v1625_v0 = vpop.f32.mrf.mxu3 }
 0x5d4   :  { %v1626_v59 = vadd.f32 %v1625_v0, %v1591_v19  ;;  %v1696_v23 = vsub.f32 %v1638_v15, %v1654_v55  ;;  %v1708_v39 = vsub.f32 %v1636_v57, %v1658_v27 }
 0x5d6   :  { %v1631_v42 = vmul.f32 %v2652_v1, %v1626_v59  ;;  %v1633_v22 = vmul.f32 %v1626_v59, %v1375_v11  ;;  %v1697_v20 = vand.u32 4294901760, %v1696_v23  ;;  %v1709_v41 = vand.u32 4294901760, %v1708_v39 }
 0x5d8   :  { %v1637_v24 = vadd.f32 %v1633_v22, %v1629_v2  ;;  %v1639_v17 = vadd.f32 %v1635_v54, %v1631_v42  ;;  %v1698_v30 = vsub.f32 %v1696_v23, %v1697_v20  ;;  %v1710_v9 = vsub.f32 %v1708_v39, %v1709_v41 }
 0x5da   :  { %v1652_v33 = vand.u32 4294901760, %v1639_v17  ;;  %v1656_v34 = vand.u32 4294901760, %v1637_v24  ;;  %v1699_v3 = vand.u32 4294901760, %v1698_v30  ;;  %v1711_v56 = vand.u32 4294901760, %v1710_v9 }
 0x5dc   :  { %v1690_v35 = vsub.f32 %v1639_v17, %v1652_v33  ;;  %1653 = vmatpush.msrb.mxu0 %v1652_v33  ;;  %1770 = vmatpush.msrb.mxu3 %v1652_v33  ;;  %v1702_v38 = vsub.f32 %v1637_v24, %v1656_v34 }
 0x5de   :  { %1655 = vmatpush.msrb.mxu0 %v1654_v55  ;;  %1736 = vmatpush.msrb.mxu2 %v1690_v35  ;;  %v1691_v47 = vand.u32 4294901760, %v1690_v35  ;;  %v1703_v16 = vand.u32 4294901760, %v1702_v38 }
 0x5df   :  { %1772 = vmatpush.msrb.mxu3 %v1654_v55 }
 0x5e0   :  { %1657 = vmatpush.msrb.mxu0 %v1656_v34  ;;  %1739 = vmatpush.msrb.mxu2 %v1696_v23  ;;  %v1692_v48 = vsub.f32 %v1690_v35, %v1691_v47  ;;  %v1704_v5 = vsub.f32 %v1702_v38, %v1703_v16  ;;  %v2661_v23 = vld [vmem:[%s3774_s4 + $0x40] sm:$0xff] }
 0x5e1   :  { %1774 = vmatpush.msrb.mxu3 %v1656_v34 }
 0x5e2   :  { %1659 = vmatpush.msrb.mxu0 %v1658_v27  ;;  %1742 = vmatpush.msrb.mxu2 %v1702_v38  ;;  %v1693_v18 = vand.u32 4294901760, %v1692_v48  ;;  %v1705_v44 = vand.u32 4294901760, %v1704_v5  ;;  %v2658_v48 = vld [vmem:[%s3774_s4 + $0x28] sm:$0xff] }
 0x5e3   :  { %1776 = vmatpush.msrb.mxu3 %v1658_v27  ;;  %1665 = vmatmul.f32.vlgmr.msrb.gmra.mxu0 %v3837_v49  ;;  %v1931_v5 = vand.u32 4294901760, %v2658_v48 }
 0x5e4   :  { %1805 = vmatpush.msra.mxu0 %v1691_v47  ;;  %1694 = vmatpush.msrb.mxu1 %v1693_v18 }
 0x5e5   :  { %1745 = vmatpush.msrb.mxu2 %v1708_v39  ;;  %1780 = vmatmul.f32.vlgmr.msrb.gmra.mxu3 %v3838_v8  ;;  %v2659_v39 = vld [vmem:[%s3774_s4 + $0x30] sm:$0xff]  ;;  %v1981_v8 = vsub.f32 %v2658_v48, %v1931_v5 }
 0x5e6   :  { %1809 = vmatpush.msra.mxu0 %v1697_v20  ;;  %1700 = vmatpush.msrb.mxu1 %v1699_v3 }
 0x5e7   :  { %1748 = vmatmul.f32.vlgmr.msrb.gmra.mxu2 %v3839_v50 }
 0x5e8   :  { %1813 = vmatpush.msra.mxu0 %v1703_v16  ;;  %1706 = vmatpush.msrb.mxu1 %v1705_v44  ;;  %v1929_v16 = vand.u32 4294901760, %v2659_v39 }
 0x5ea   :  { %1817 = vmatpush.msra.mxu0 %v1709_v41  ;;  %1712 = vmatpush.msrb.mxu1 %v1711_v56  ;;  %v1975_v18 = vsub.f32 %v2659_v39, %v1929_v16  ;;  %v1982_v56 = vand.u32 4294901760, %v1981_v8 }
 0x5eb   :  { %1673 = vmatmul.f32.gmra.mxu0 %v3840_v10  ;;  %1714 = vmatmul.f32.vlgmr.msrb.gmra.mxu1 %v3841_v60 }
 0x5ec   :  { %1840 = vmatpush.msra.mxu1 %v1652_v33  ;;  %v1925_v33 = vand.u32 4294901760, %v2661_v23  ;;  %v1976_v9 = vand.u32 4294901760, %v1975_v18 }
 0x5ed   :  { %1786 = vmatmul.f32.gmra.mxu3 %v3842_v45 }
 0x5ee   :  { %1842 = vmatpush.msra.mxu1 %v1654_v55  ;;  %v1963_v35 = vsub.f32 %v2661_v23, %v1925_v33  ;;  %1926 = vmatpush.msra.mxu2 %v1925_v33  ;;  %v1977_v50 = vsub.f32 %v1975_v18, %v1976_v9 }
 0x5ef   :  { %1753 = vmatmul.f32.gmra.mxu2 %v3843_v28 }
 0x5f0   :  { %1844 = vmatpush.msra.mxu1 %v1656_v34  ;;  %v2660_v34 = vld [vmem:[%s3774_s4 + $0x38] sm:$0xff]  ;;  %v1964_v20 = vand.u32 4294901760, %v1963_v35  ;;  %2009 = vmatpush.msrb.mxu0 %v1963_v35  ;;  %v1978_v10 = vand.u32 4294901760, %v1977_v50 }
 0x5f1   :  { %v1927_v38 = vand.u32 4294901760, %v2660_v34 }
 0x5f2   :  { %1846 = vmatpush.msra.mxu1 %v1658_v27  ;;  %v1965_v30 = vsub.f32 %v1963_v35, %v1964_v20 }
 0x5f3   :  { %1718 = vmatmul.f32.gmra.mxu1 %v3844_v14  ;;  %1819 = vmatmul.f32.vlgmr.msra.gmra.mxu0 %v3841_v60  ;;  %v1969_v47 = vsub.f32 %v2660_v34, %v1927_v38  ;;  %v2678_v34 = vld [vmem:[%s3775_s5 + $0x100] sm:$0xff] }
 0x5f4   :  { %2043 = vmatpush.msrb.mxu1 %v1925_v33  ;;  %1928 = vmatpush.msra.mxu2 %v1927_v38  ;;  %v1966_v49 = vand.u32 4294901760, %v1965_v30  ;;  %v3432_v35 = vand.u32 4294901760, %v2678_v34 }
 0x5f5   :  { %v1970_v41 = vand.u32 4294901760, %v1969_v47  ;;  %2012 = vmatpush.msrb.mxu0 %v1969_v47 }
 0x5f6   :  { %2045 = vmatpush.msrb.mxu1 %v1927_v38  ;;  %1930 = vmatpush.msra.mxu2 %v1929_v16  ;;  %v3438_v39 = vsub.f32 %v2678_v34, %v3432_v35 }
 0x5f7   :  { %v1971_v3 = vsub.f32 %v1969_v47, %v1970_v41  ;;  %2015 = vmatpush.msrb.mxu0 %v1975_v18  ;;  %1967 = vmatpush.msra.mxu3 %v1966_v49  ;;  %v2676_v47 = vld [vmem:[%s3775_s5 + $0xf0] sm:$0xff] }
 0x5f8   :  { %2047 = vmatpush.msrb.mxu1 %v1929_v16  ;;  %1932 = vmatpush.msra.mxu2 %v1931_v5  ;;  %v3451_v30 = vand.u32 4294901760, %v2676_v47 }
 0x5f9   :  { %v1972_v44 = vand.u32 4294901760, %v1971_v3  ;;  %2018 = vmatpush.msrb.mxu0 %v1981_v8 }
 0x5fa   :  { %2049 = vmatpush.msrb.mxu1 %v1931_v5  ;;  %2078 = vmatpush.msrb.mxu2 %v1964_v20  ;;  %v3464_v49 = vsub.f32 %v2676_v47, %v3451_v30 }
 0x5fb   :  { %1823 = vmatmul.f32.gmra.mxu0 %v3844_v14  ;;  %1848 = vmatmul.f32.vlgmr.msra.gmra.mxu1 %v3841_v60  ;;  %v1983_v60 = vsub.f32 %v1981_v8, %v1982_v56 }
 0x5fc   :  { %1973 = vmatpush.msra.mxu3 %v1972_v44  ;;  %2082 = vmatpush.msrb.mxu2 %v1970_v41  ;;  %v2675_v41 = vld [vmem:[%s3775_s5 + $0xe8] sm:$0xff]  ;;  %v2271_v50 = vand.u32 4294901760, %v3464_v49 }
 0x5fd   :  { %v1984_v45 = vand.u32 4294901760, %v1983_v60  ;;  %2209 = vmatpush.msra.mxu0 %v3432_v35  ;;  %v3466_v3 = vand.u32 4294901760, %v2675_v41 }
 0x5fe   :  { %1979 = vmatpush.msra.mxu3 %v1978_v10  ;;  %2086 = vmatpush.msrb.mxu2 %v1976_v9  ;;  %v2674_v9 = vld [vmem:[%s3775_s5 + $0xe0] sm:$0xff] }
 0x5ff   :  { %v3483_v60 = vand.u32 4294901760, %v2674_v9 }
 0x600   :  { %1985 = vmatpush.msra.mxu3 %v1984_v45  ;;  %2090 = vmatpush.msrb.mxu2 %v1982_v56  ;;  %v3479_v56 = vsub.f32 %v2675_v41, %v3466_v3  ;;  %v2673_v45 = vld [vmem:[%s3775_s5 + $0xd8] sm:$0xff] }
 0x602   :  { %2113 = vmatpush.msrb.mxu3 %v1925_v33 }
 0x603   :  { %1852 = vmatmul.f32.gmra.mxu1 %v3844_v14 }
 0x604   :  { %2115 = vmatpush.msrb.mxu3 %v1927_v38  ;;  %v2677_v38 = vld [vmem:[%s3775_s5 + $0xf8] sm:$0xff] }
 0x605   :  { %v3440_v20 = vand.u32 4294901760, %v2677_v38 }
 0x606   :  { %2117 = vmatpush.msrb.mxu3 %v1929_v16  ;;  %v2259_v16 = vand.u32 4294901760, %v3438_v39 }
 0x607   :  { %v3449_v48 = vsub.f32 %v2677_v38, %v3440_v20  ;;  %2211 = vmatpush.msra.mxu0 %v3440_v20 }
 0x608   :  { %2119 = vmatpush.msrb.mxu3 %v1931_v5  ;;  %v2260_v18 = vsub.f32 %v3438_v39, %v2259_v16 }
 0x609   :  { %v2265_v5 = vand.u32 4294901760, %v3449_v48  ;;  %2213 = vmatpush.msra.mxu0 %v3451_v30 }
 0x60a   :  { %v2261_v8 = vand.u32 4294901760, %v2260_v18  ;;  %v2667_v18 = vld [vmem:[%s3775_s5 + $0xa8] sm:$0xff] }
 0x60b   :  { %v2266_v44 = vsub.f32 %v3449_v48, %v2265_v5  ;;  %2215 = vmatpush.msra.mxu0 %v3466_v3 }
 0x60c   :  { %2262 = vmatpush.msra.mxu1 %v2261_v8 }
 0x60d   :  { %2217 = vmatpush.msra.mxu0 %v3483_v60 }
 0x660   :  { %v1666_v51 = vpop.f32.mrf.mxu0 }
 0x661   :  { %v1667_v6 = vadd.f32 %v1666_v51, %v3337_v46 }
 0x668   :  { %v1674_v29 = vpop.f32.mrf.mxu0  ;;  %v1715_v58 = vpop.f32.mrf.mxu1 }
 0x669   :  { %v1716_v61 = vadd.f32 %v1715_v58, %v1667_v6  ;;  %v1781_v37 = vpop.f32.mrf.mxu3  ;;  %v1675_v52 = vadd.f32 %v1674_v29, %v3333_v26 }
 0x66a   :  { %v1749_v21 = vpop.f32.mrf.mxu2 }
 0x66b   :  { %v1750_v11 = vadd.f32 %v1749_v21, %v1716_v61 }
 0x66d   :  { %v1782_v1 = vadd.f32 %v1781_v37, %v1750_v11 }
 0x670   :  { %v1719_v43 = vpop.f32.mrf.mxu1  ;;  %v1820_v13 = vpop.f32.mrf.mxu0 }
 0x671   :  { %v1720_v53 = vadd.f32 %v1719_v43, %v1675_v52  ;;  %v1821_v12 = vadd.f32 %v1820_v13, %v1782_v1  ;;  %v1787_v62 = vpop.f32.mrf.mxu3 }
 0x672   :  { %v1754_v4 = vpop.f32.mrf.mxu2 }
 0x673   :  { %v1755_v7 = vadd.f32 %v1754_v4, %v1720_v53  ;;  %v2695_v53 = vld [vmem:[%s3773_s3 + $0x28] ss:$0 sm:$0xff] }
 0x675   :  { %v1788_v46 = vadd.f32 %v1787_v62, %v1755_v7 }
 0x678   :  { %v1849_v63 = vpop.f32.mrf.mxu1  ;;  %v1824_v36 = vpop.f32.mrf.mxu0 }
 0x679   :  { %v1850_v31 = vadd.f32 %v1849_v63, %v1821_v12  ;;  %v1825_v40 = vadd.f32 %v1824_v36, %v1788_v46  ;;  %v2696_v63 = vld [vmem:[%s3773_s3 + $0x29] ss:$0 sm:$0xff] }
 0x67b   :  { %v1856_v15 = vsel %vm338_vm1, %v1850_v31, 0.0 }
 0x67c   :  { %1857 = vadd.xlane.f32.xlu2 %v1856_v15 }
 0x680   :  { %v1853_v19 = vpop.f32.mrf.mxu1 }
 0x681   :  { %v1854_v0 = vadd.f32 %v1853_v19, %v1825_v40 }
 0x683   :  { %v1859_v57 = vsel %vm338_vm1, %v1854_v0, 0.0 }
 0x684   :  { %1860 = vadd.xlane.f32.xlu0 %v1859_v57 }
 0x6ef   :  { %v1858_v26 = vpop.xlane.xlu2 %1857 }
 0x6f0   :  { %v1862_v55 = vmul.f32 %v1858_v26, %v2953_v25 }
 0x6f2   :  { %v3388_v59 = vsub.f32 %v1850_v31, %v1862_v55 }
 0x6f4   :  { %v1866_v2 = vmul.f32 %v3388_v59, %v3388_v59 }
 0x6f6   :  { %v1868_v54 = vsel %vm338_vm1, %v1866_v2, 0.0 }
 0x6f7   :  { %v1861_v42 = vpop.xlane.xlu0 %1860  ;;  %1869 = vadd.xlane.f32.xlu1 %v1868_v54 }
 0x6f8   :  { %v1863_v22 = vmul.f32 %v1861_v42, %v2953_v25 }
 0x6fa   :  { %v3394_v27 = vsub.f32 %v1854_v0, %v1863_v22 }
 0x6fc   :  { %v1867_v24 = vmul.f32 %v3394_v27, %v3394_v27 }
 0x6fe   :  { %v1871_v17 = vsel %vm338_vm1, %v1867_v24, 0.0 }
 0x6ff   :  { %1872 = vadd.xlane.f32.xlu2 %v1871_v17 }
 0x76a   :  { %v1870_v28 = vpop.xlane.xlu1 %1869 }
 0x76b   :  { %v1874_v14 = vmul.f32 %v1870_v28, %v2953_v25  ;;  %v2267_v28 = vand.u32 4294901760, %v2266_v44 }
 0x76d   :  { %v1876_v51 = vadd.f32 1e-12, %v1874_v14  ;;  %v2272_v14 = vsub.f32 %v3464_v49, %v2271_v50  ;;  %2268 = vmatpush.msra.mxu1 %v2267_v28 }
 0x76f   :  { %2719 = vrsqrt.f32 %v1876_v51  ;;  %vm1884_vm11 = vweird.f32 %v1876_v51 }
 0x772   :  { %v1873_v29 = vpop.xlane.xlu2 %1872 }
 0x773   :  { %v1875_v58 = vmul.f32 %v1873_v29, %v2953_v25  ;;  %v3493_v29 = vand.u32 4294901760, %v2673_v45 }
 0x775   :  { %v2720_v6 = vpop.eup %2719  ;;  %v1877_v21 = vadd.f32 1e-12, %v1875_v58  ;;  %v3499_v58 = vld [vmem:[%s3774_s4 + $0x48] ss:$0 sm:$0xff]  ;;  %2219 = vmatpush.msra.mxu0 %v3493_v29  ;;  %s2765_s4 = smov 8  }
 0x776   :  { %v1879_v61 = vmul.f32 %v2720_v6, %v1876_v51  ;;  %vm1885_vm10 = vweird.f32 %v2720_v6  ;;  %v2277_v51 = vand.u32 4294901760, %v3479_v56 }
 0x777   :  { %2721 = vrsqrt.f32 %v1877_v21  ;;  %vm1886_vm12 = vmor %vm1884_vm11, %vm1885_vm10  ;;  %vm1894_vm14 = vweird.f32 %v1877_v21 }
 0x778   :  { %v1880_v37 = vmul.f32 %v2720_v6, %v1879_v61 }
 0x77a   :  { %v1881_v43 = vmul.f32 0.5, %v1880_v37  ;;  %v2273_v37 = vand.u32 4294901760, %v2272_v14 }
 0x77c   :  { %v1882_v11 = vsub.f32 1.5, %v1881_v43  ;;  %v2278_v43 = vsub.f32 %v3479_v56, %v2277_v51  ;;  %2274 = vmatpush.msra.mxu1 %v2273_v37 }
 0x77d   :  { %v2722_v13 = vpop.eup %2721 }
 0x77e   :  { %v1883_v52 = vmul.f32 %v2720_v6, %v1882_v11  ;;  %v1889_v1 = vmul.f32 %v2722_v13, %v1877_v21  ;;  %vm1895_vm13 = vweird.f32 %v2722_v13  ;;  %v2672_v21 = vld [vmem:[%s3775_s5 + $0xd0] sm:$0xff]  ;;  %v3513_v11 = vsub.f32 %v2673_v45, %v3493_v29 }
 0x77f   :  { %vm1896_vm15 = vmor %vm1894_vm14, %vm1895_vm13 }
 0x780   :  { %v1887_v4 = vsel %vm1886_vm12, %v2720_v6, %v1883_v52  ;;  %v1890_v12 = vmul.f32 %v2722_v13, %v1889_v1  ;;  %v3502_v6 = vsub.f32 %v2674_v9, %v3483_v60  ;;  %v2671_v1 = vld [vmem:[%s3775_s5 + $0xc8] sm:$0xff] }
 0x781   :  { %v1898_v7 = vmul.f32 %v1887_v4, %v3388_v59  ;;  %v2289_v4 = vand.u32 4294901760, %v3513_v11 }
 0x782   :  { %v1891_v31 = vmul.f32 0.5, %v1890_v12  ;;  %v2283_v52 = vand.u32 4294901760, %v3502_v6 }
 0x783   :  { %v1901_v62 = vmul.f32 %v2695_v53, %v1898_v7 }
 0x784   :  { %v1892_v15 = vsub.f32 1.5, %v1891_v31  ;;  %v2284_v31 = vsub.f32 %v3502_v6, %v2283_v52 }
 0x785   :  { %v3420_v36 = vadd.f32 %v2696_v63, %v1901_v62  ;;  %v2670_v62 = vld [vmem:[%s3775_s5 + $0xc0] sm:$0xff] }
 0x786   :  { %v1893_v46 = vmul.f32 %v2722_v13, %v1892_v15  ;;  %v2290_v15 = vsub.f32 %v3513_v11, %v2289_v4 }
 0x787   :  { %v1908_v40 = vsel %vm338_vm1, %v3420_v36, 0 }
 0x788   :  { %v1897_v19 = vsel %vm1896_vm15, %v2722_v13, %v1893_v46  ;;  %v1933_v0 = vand.u32 4294901760, %v1908_v40  ;;  %v3515_v13 = vand.u32 4294901760, %v2672_v21 }
 0x789   :  { %v1899_v57 = vmul.f32 %v1897_v19, %v3394_v27  ;;  %v3546_v19 = vand.u32 4294901760, %v2670_v62 }
 0x78a   :  { %1987 = vmatmul.f32.vlgmr.msra.gmra.mxu3 %v1933_v0  ;;  %v1934_v26 = vsub.f32 %v1908_v40, %v1933_v0  ;;  %v3525_v12 = vsub.f32 %v2672_v21, %v3515_v13  ;;  %2221 = vmatpush.msra.mxu0 %v3515_v13  ;;  %v2666_v21 = vld [vmem:[%s3775_s5 + $0xa0] sm:$0xff] }
 0x78b   :  { %v1902_v55 = vmul.f32 %v2695_v53, %v1899_v57  ;;  %2422 = vmatpush.msra.mxu3 %v3432_v35  ;;  %v2279_v53 = vand.u32 4294901760, %v2278_v43  ;;  %v2669_v57 = vld [vmem:[%s3775_s5 + $0xb8] sm:$0xff] }
 0x78c   :  { %2021 = vmatmul.f32.vlgmr.msrb.gmra.mxu0 %v1934_v26  ;;  %v1935_v59 = vand.u32 4294901760, %v1934_v26  ;;  %v2295_v46 = vand.u32 4294901760, %v3525_v12 }
 0x78d   :  { %v3425_v2 = vadd.f32 %v2696_v63, %v1902_v55  ;;  %2424 = vmatpush.msra.mxu3 %v3440_v20  ;;  %v3527_v63 = vand.u32 4294901760, %v2671_v1  ;;  %2280 = vmatpush.msra.mxu1 %v2279_v53  ;;  %v3603_v53 = vand.u32 4294901760, %v2666_v21 }
 0x78e   :  { %v1936_v54 = vsub.f32 %v1934_v26, %v1935_v59  ;;  %2053 = vmatmul.f32.vlgmr.msrb.gmra.mxu1 %v1935_v59  ;;  %v2291_v26 = vand.u32 4294901760, %v2290_v15  ;;  %v2296_v55 = vsub.f32 %v3525_v12, %v2295_v46 }
 0x78f   :  { %v1911_v42 = vsel %vm338_vm1, %v3425_v2, 0  ;;  %2426 = vmatpush.msra.mxu3 %v3451_v30  ;;  %v3544_v40 = vsub.f32 %v2671_v1, %v3527_v63  ;;  %2223 = vmatpush.msra.mxu0 %v3527_v63  ;;  %v3619_v15 = vsub.f32 %v2666_v21, %v3603_v53 }
 0x790   :  { %v1937_v22 = vand.u32 4294901760, %v1936_v54  ;;  %v1941_v24 = vand.u32 4294901760, %v1911_v42  ;;  %v3559_v54 = vsub.f32 %v2670_v62, %v3546_v19 }
 0x791   :  { %2428 = vmatpush.msra.mxu3 %v3466_v3  ;;  %v2301_v59 = vand.u32 4294901760, %v3544_v40  ;;  %2225 = vmatpush.msra.mxu0 %v3546_v19 }
 0x792   :  { %1938 = vmatmul.f32.vlgmr.msra.gmra.mxu2 %v1937_v22  ;;  %1991 = vmatmul.f32.gmra.mxu3 %v1941_v24  ;;  %v1942_v17 = vsub.f32 %v1911_v42, %v1941_v24  ;;  %v2307_v38 = vand.u32 4294901760, %v3559_v54 }
 0x793   :  { %2364 = vmatpush.msra.mxu2 %v3438_v39  ;;  %2430 = vmatpush.msra.mxu3 %v3483_v60  ;;  %v2302_v34 = vsub.f32 %v3544_v40, %v2301_v59 }
 0x794   :  { %2026 = vmatmul.f32.gmra.mxu0 %v1942_v17  ;;  %v1943_v23 = vand.u32 4294901760, %v1942_v17  ;;  %v2308_v8 = vsub.f32 %v3559_v54, %v2307_v38 }
 0x795   :  { %2367 = vmatpush.msra.mxu2 %v3449_v48  ;;  %2432 = vmatpush.msra.mxu3 %v3493_v29  ;;  %v2303_v9 = vand.u32 4294901760, %v2302_v34 }
 0x796   :  { %v1944_v27 = vsub.f32 %v1942_v17, %v1943_v23  ;;  %2059 = vmatmul.f32.gmra.mxu1 %v1943_v23  ;;  %v2668_v17 = vld [vmem:[%s3775_s5 + $0xb0] sm:$0xff]  ;;  %v2309_v37 = vand.u32 4294901760, %v2308_v8  ;;  %v2663_v8 = vld [vmem:[%s3775_s5 + $0x88] sm:$0xff] }
 0x797   :  { %2370 = vmatpush.msra.mxu2 %v3464_v49  ;;  %2434 = vmatpush.msra.mxu3 %v3515_v13  ;;  %v3572_v47 = vand.u32 4294901760, %v2668_v17 }
 0x798   :  { %v1945_v33 = vand.u32 4294901760, %v1944_v27 }
 0x799   :  { %2373 = vmatpush.msra.mxu2 %v3479_v56  ;;  %2436 = vmatpush.msra.mxu3 %v3527_v63  ;;  %v3587_v44 = vsub.f32 %v2668_v17, %v3572_v47 }
 0x79a   :  { %1946 = vmatmul.f32.gmra.mxu2 %v1945_v33  ;;  %2121 = vmatmul.f32.vlgmr.msrb.gmra.mxu3 %v1933_v0  ;;  %v2297_v33 = vand.u32 4294901760, %v2296_v55 }
 0x79b   :  { %2376 = vmatpush.msra.mxu2 %v3502_v6  ;;  %2438 = vmatpush.msra.mxu3 %v3546_v19  ;;  %v2319_v43 = vand.u32 4294901760, %v3587_v44 }
 0x79d   :  { %2379 = vmatpush.msra.mxu2 %v3513_v11 }
 0x79f   :  { %2382 = vmatpush.msra.mxu2 %v3525_v12 }
 0x7a1   :  { %2385 = vmatpush.msra.mxu2 %v3544_v40 }
 0x7a2   :  { %2092 = vmatmul.f32.vlgmr.msrb.gmra.mxu2 %v1933_v0  ;;  %2125 = vmatmul.f32.gmra.mxu3 %v1941_v24  ;;  %v2285_v0 = vand.u32 4294901760, %v2284_v31  ;;  %v2320_v31 = vsub.f32 %v3587_v44, %v2319_v43 }
 0x7a3   :  { %2388 = vmatpush.msra.mxu2 %v3559_v54 }
 0x7a4   :  { %2286 = vmatpush.msra.mxu1 %v2285_v0 }
 0x7a6   :  { %2292 = vmatpush.msra.mxu1 %v2291_v26 }
 0x7a8   :  { %2298 = vmatpush.msra.mxu1 %v2297_v33  ;;  %v2331_v33 = vand.u32 4294901760, %v3619_v15 }
 0x7aa   :  { %2096 = vmatmul.f32.gmra.mxu2 %v1941_v24  ;;  %v3562_v24 = vand.u32 4294901760, %v2669_v57  ;;  %2304 = vmatpush.msra.mxu1 %v2303_v9  ;;  %v2332_v21 = vsub.f32 %v3619_v15, %v2331_v33 }
 0x7ac   :  { %v3577_v41 = vsub.f32 %v2669_v57, %v3562_v24  ;;  %2227 = vmatpush.msra.mxu0 %v3562_v24  ;;  %2440 = vmatpush.msra.mxu3 %v3562_v24 }
 0x7ad   :  { %2310 = vmatpush.msra.mxu1 %v2309_v37  ;;  %v3648_v37 = vand.u32 4294901760, %v2663_v8 }
 0x7ae   :  { %v2313_v14 = vand.u32 4294901760, %v3577_v41  ;;  %2229 = vmatpush.msra.mxu0 %v3572_v47  ;;  %2391 = vmatpush.msra.mxu2 %v3577_v41 }
 0x7af   :  { %2442 = vmatpush.msra.mxu3 %v3572_v47 }
 0x7b0   :  { %2394 = vmatpush.msra.mxu2 %v3587_v44 }
 0x809   :  { %v2022_v23 = vpop.f32.mrf.mxu0 }
 0x80d   :  { %v1988_v10 = vpop.f32.mrf.mxu3 }
 0x815   :  { %v1939_v61 = vpop.f32.mrf.mxu2  ;;  %v1992_v22 = vpop.f32.mrf.mxu3 }
 0x816   :  { %v1940_v7 = vadd.f32 %v3499_v58, %v1939_v61  ;;  %v2054_v61 = vpop.f32.mrf.mxu1 }
 0x818   :  { %v1989_v42 = vadd.f32 %v1988_v10, %v1940_v7  ;;  %v3589_v10 = vand.u32 4294901760, %v2667_v18  ;;  %v2665_v7 = vld [vmem:[%s3775_s5 + $0x98] sm:$0xff] }
 0x819   :  { %v3621_v0 = vand.u32 4294901760, %v2665_v7 }
 0x81a   :  { %v2023_v28 = vadd.f32 %v2022_v23, %v1989_v42  ;;  %v3601_v1 = vsub.f32 %v2667_v18, %v3589_v10  ;;  %2231 = vmatpush.msra.mxu0 %v3589_v10  ;;  %2444 = vmatpush.msra.mxu3 %v3589_v10  ;;  %v2664_v42 = vld [vmem:[%s3775_s5 + $0x90] sm:$0xff]  ;;  %v2321_v23 = vand.u32 4294901760, %v2320_v31 }
 0x81b   :  { %v3634_v34 = vsub.f32 %v2665_v7, %v3621_v0  ;;  %v3638_v9 = vand.u32 4294901760, %v2664_v42 }
 0x81c   :  { %v2325_v62 = vand.u32 4294901760, %v3601_v1  ;;  %v2055_v26 = vadd.f32 %v2054_v61, %v2023_v28  ;;  %2233 = vmatpush.msra.mxu0 %v3603_v53  ;;  %2397 = vmatpush.msra.mxu2 %v3601_v1 }
 0x81d   :  { %v1947_v27 = vpop.f32.mrf.mxu2  ;;  %2446 = vmatpush.msra.mxu3 %v3603_v53  ;;  %v2337_v61 = vand.u32 4294901760, %v3634_v34  ;;  %v3655_v31 = vsub.f32 %v2664_v42, %v3638_v9 }
 0x81e   :  { %v1948_v45 = vadd.f32 %v3499_v58, %v1947_v27  ;;  %v2314_v58 = vsub.f32 %v3577_v41, %v2313_v14  ;;  %v2326_v27 = vsub.f32 %v3601_v1, %v2325_v62  ;;  %2235 = vmatpush.msra.mxu0 %v3621_v0  ;;  %2400 = vmatpush.msra.mxu2 %v3619_v15 }
 0x81f   :  { %2448 = vmatpush.msra.mxu3 %v3621_v0  ;;  %v2343_v42 = vand.u32 4294901760, %v3655_v31 }
 0x820   :  { %v1993_v57 = vadd.f32 %v1992_v22, %v1948_v45  ;;  %v2315_v55 = vand.u32 4294901760, %v2314_v58  ;;  %v2122_v22 = vpop.f32.mrf.mxu3  ;;  %v2027_v45 = vpop.f32.mrf.mxu0  ;;  %v2327_v28 = vand.u32 4294901760, %v2326_v27  ;;  %2237 = vmatpush.msra.mxu0 %v3638_v9  ;;  %2403 = vmatpush.msra.mxu2 %v3634_v34 }
 0x821   :  { %2450 = vmatpush.msra.mxu3 %v3638_v9 }
 0x822   :  { %2316 = vmatpush.msra.mxu1 %v2315_v55  ;;  %v2028_v7 = vadd.f32 %v2027_v45, %v1993_v57  ;;  %v2338_v55 = vsub.f32 %v3634_v34, %v2337_v61  ;;  %2239 = vmatpush.msra.mxu0 %v3648_v37  ;;  %v2344_v45 = vsub.f32 %v3655_v31, %v2343_v42 }
 0x823   :  { %2406 = vmatpush.msra.mxu2 %v3655_v31  ;;  %2452 = vmatpush.msra.mxu3 %v3648_v37 }
 0x824   :  { %2322 = vmatpush.msra.mxu1 %v2321_v23  ;;  %v2060_v23 = vpop.f32.mrf.mxu1  ;;  %v2339_v27 = vand.u32 4294901760, %v2338_v55  ;;  %2469 = vmatpush.msrb.mxu0 %v2259_v16 }
 0x825   :  { %v2093_v17 = vpop.f32.mrf.mxu2 }
 0x826   :  { %v2094_v18 = vadd.f32 %v2093_v17, %v2055_v26  ;;  %v2333_v26 = vand.u32 4294901760, %v2332_v21  ;;  %v3662_v17 = vsub.f32 %v2663_v8, %v3648_v37  ;;  %2328 = vmatpush.msra.mxu1 %v2327_v28  ;;  %v2061_v8 = vadd.f32 %v2060_v23, %v2028_v7  ;;  %2473 = vmatpush.msrb.mxu0 %v2265_v5 }
 0x827   :  { %v2345_v7 = vand.u32 4294901760, %v2344_v45 }
 0x828   :  { %v3652_v58 = vadd.f32 %v2122_v22, %v2094_v18  ;;  %v2349_v22 = vand.u32 4294901760, %v3662_v17  ;;  %2334 = vmatpush.msra.mxu1 %v2333_v26  ;;  %2409 = vmatpush.msra.mxu2 %v3662_v17  ;;  %v2126_v55 = vpop.f32.mrf.mxu3 }
 0x829   :  { %2477 = vmatpush.msrb.mxu0 %v2271_v50 }
 0x82a   :  { %v3667_v57 = vand.u32 2147483647, %v3652_v58  ;;  %v2350_v21 = vsub.f32 %v3662_v17, %v2349_v22  ;;  %2340 = vmatpush.msra.mxu1 %v2339_v27  ;;  %vm2129_vm9 = vcmp.ge.f32.partialorder %v3652_v58, 0.0 }
 0x82b   :  { %2481 = vmatpush.msrb.mxu0 %v2277_v51  ;;  %v2131_v45 = vsel %vm2129_vm9, 1.0, %v2762_v32 }
 0x82c   :  { %v2135_v18 = vmul.f32 0.23164189, %v3667_v57  ;;  %v2351_v26 = vand.u32 4294901760, %v2350_v21  ;;  %2346 = vmatpush.msra.mxu1 %v2345_v7 }
 0x82d   :  { %v2097_v28 = vpop.f32.mrf.mxu2  ;;  %2485 = vmatpush.msrb.mxu0 %v2283_v52 }
 0x82e   :  { %v2137_v39 = vadd.f32 1.0, %v2135_v18  ;;  %v2098_v16 = vadd.f32 %v2097_v28, %v2061_v8  ;;  %2352 = vmatpush.msra.mxu1 %v2351_v26 }
 0x82f   :  { %2489 = vmatpush.msrb.mxu0 %v2289_v4  ;;  %v2187_v4 = vmul.f32 -0.5, %v3667_v57 }
 0x830   :  { %2723 = vrcp.f32 %v2137_v39  ;;  %v3688_v23 = vadd.f32 %v2126_v55, %v2098_v16  ;;  %2540 = vmatpush.msrb.mxu1 %v3432_v35  ;;  %v2150_v35 = vand.u32 2147483648, %v2137_v39  ;;  %v2148_v6 = vand.u32 2147483647, %v2137_v39 }
 0x831   :  { %2493 = vmatpush.msrb.mxu0 %v2295_v46  ;;  %vm2144_vm2 = vweird.f32 %v2137_v39 }
 0x832   :  { %v3693_v48 = vand.u32 2147483647, %v3688_v23  ;;  %2542 = vmatpush.msrb.mxu1 %v3440_v20  ;;  %vm2149_vm4 = vcmp.eq.f32.partialorder %v2148_v6, 8.507059e+37  ;;  %vm2130_vm10 = vcmp.ge.f32.partialorder %v3688_v23, 0.0 }
 0x833   :  { %2497 = vmatpush.msrb.mxu0 %v2301_v59 }
 0x834   :  { %v2136_v5 = vmul.f32 0.23164189, %v3693_v48  ;;  %2544 = vmatpush.msrb.mxu1 %v3451_v30 }
 0x835   :  { %2501 = vmatpush.msrb.mxu0 %v2307_v38 }
 0x836   :  { %v2724_v49 = vpop.eup %2723  ;;  %v2138_v56 = vadd.f32 1.0, %v2136_v5  ;;  %2546 = vmatpush.msrb.mxu1 %v3466_v3  ;;  %v2151_v3 = vor.u32 1.1754944e-38, %v2150_v35 }
 0x837   :  { %v2140_v50 = vmul.f32 %v2724_v49, %v2137_v39  ;;  %vm2145_vm0 = vweird.f32 %v2724_v49  ;;  %2505 = vmatpush.msrb.mxu0 %v2313_v14 }
 0x838   :  { %2725 = vrcp.f32 %v2138_v56  ;;  %2548 = vmatpush.msrb.mxu1 %v3483_v60  ;;  %vm2146_vm3 = vmor %vm2144_vm2, %vm2145_vm0  ;;  %v2165_v59 = vand.u32 2147483648, %v2138_v56  ;;  %v2163_v38 = vand.u32 2147483647, %v2138_v56  ;;  %vm2159_vm6 = vweird.f32 %v2138_v56 }
 0x839   :  { %v2141_v51 = vsub.f32 1.0, %v2140_v50  ;;  %2509 = vmatpush.msrb.mxu0 %v2319_v43 }
 0x83a   :  { %2550 = vmatpush.msrb.mxu1 %v3493_v29  ;;  %v2166_v14 = vor.u32 1.1754944e-38, %v2165_v59  ;;  %vm2164_vm8 = vcmp.eq.f32.partialorder %v2163_v38, 8.507059e+37 }
 0x83b   :  { %v2142_v20 = vmul.f32 %v2724_v49, %v2141_v51  ;;  %2513 = vmatpush.msrb.mxu0 %v2325_v62  ;;  %v2202_v51 = vmul.f32 0.5, %v3688_v23 }
 0x83c   :  { %2552 = vmatpush.msrb.mxu1 %v3515_v13  ;;  %v2189_v13 = vmul.f32 %v2187_v4, %v3667_v57 }
 0x83d   :  { %v2143_v30 = vadd.f32 %v2724_v49, %v2142_v20  ;;  %2517 = vmatpush.msrb.mxu0 %v2331_v33 }
 0x83e   :  { %v2726_v11 = vpop.eup %2725  ;;  %2554 = vmatpush.msrb.mxu1 %v3527_v63 }
 0x83f   :  { %v2147_v52 = vsel %vm2146_vm3, %v2724_v49, %v2143_v30  ;;  %v2155_v12 = vmul.f32 %v2726_v11, %v2138_v56  ;;  %vm2160_vm5 = vweird.f32 %v2726_v11  ;;  %2521 = vmatpush.msrb.mxu0 %v2337_v61  ;;  %v2132_v49 = vsel %vm2130_vm10, 1.0, %v2762_v32 }
 0x840   :  { %v2152_v60 = vsel %vm2149_vm4, %v2151_v3, %v2147_v52  ;;  %2556 = vmatpush.msrb.mxu1 %v3546_v19  ;;  %vm2161_vm7 = vmor %vm2159_vm6, %vm2160_vm5  ;;  %v2191_v19 = vmul.f32 1.442695, %v2189_v13 }
 0x841   :  { %v2169_v46 = vmul.f32 1.0614054, %v2152_v60  ;;  %v2156_v29 = vsub.f32 1.0, %v2155_v12  ;;  %2525 = vmatpush.msrb.mxu0 %v2343_v42 }
 0x842   :  { %2558 = vmatpush.msrb.mxu1 %v3562_v24  ;;  %v2188_v24 = vmul.f32 -0.5, %v3693_v48  ;;  %2727 = vpow2.f32 %v2191_v19 }
 0x843   :  { %v2171_v40 = vadd.f32 -1.4531521, %v2169_v46  ;;  %v2157_v54 = vmul.f32 %v2726_v11, %v2156_v29  ;;  %2529 = vmatpush.msrb.mxu0 %v2349_v22 }
 0x844   :  { %2560 = vmatpush.msrb.mxu1 %v3572_v47  ;;  %v2190_v61 = vmul.f32 %v2188_v24, %v3693_v48 }
 0x845   :  { %v2173_v41 = vmul.f32 %v2171_v40, %v2152_v60  ;;  %v2158_v63 = vadd.f32 %v2726_v11, %v2157_v54 }
 0x846   :  { %2562 = vmatpush.msrb.mxu1 %v3589_v10  ;;  %v2193_v27 = vmul.f32 1.442695, %v2190_v61 }
 0x847   :  { %v2175_v44 = vadd.f32 1.4214138, %v2173_v41  ;;  %v2162_v43 = vsel %vm2161_vm7, %v2726_v11, %v2158_v63 }
 0x848   :  { %v2167_v62 = vsel %vm2164_vm8, %v2166_v14, %v2162_v43  ;;  %2564 = vmatpush.msrb.mxu1 %v3603_v53  ;;  %v2728_v17 = vpop.eup %2727  ;;  %2729 = vpow2.f32 %v2193_v27 }
 0x849   :  { %v2177_v1 = vmul.f32 %v2175_v44, %v2152_v60  ;;  %v2170_v15 = vmul.f32 1.0614054, %v2167_v62 }
 0x84a   :  { %2566 = vmatpush.msrb.mxu1 %v3621_v0 }
 0x84b   :  { %v2179_v33 = vadd.f32 -0.28449672, %v2177_v1  ;;  %v2172_v47 = vadd.f32 -1.4531521, %v2170_v15 }
 0x84c   :  { %2568 = vmatpush.msrb.mxu1 %v3638_v9  ;;  %v2201_v9 = vmul.f32 0.5, %v3652_v58 }
 0x84d   :  { %v2181_v34 = vmul.f32 %v2179_v33, %v2152_v60  ;;  %v2174_v31 = vmul.f32 %v2172_v47, %v2167_v62 }
 0x84e   :  { %2570 = vmatpush.msrb.mxu1 %v3648_v37  ;;  %v2730_v7 = vpop.eup %2729 }
 0x84f   :  { %v2183_v57 = vadd.f32 0.2548296, %v2181_v34  ;;  %v2176_v42 = vadd.f32 1.4214138, %v2174_v31 }
 0x851   :  { %v2185_v10 = vmul.f32 %v2183_v57, %v2152_v60  ;;  %v2178_v22 = vmul.f32 %v2176_v42, %v2167_v62  ;;  %v2698_v60 = vld [vmem:[%s3775_s5 + $0x108] ss:$0 sm:$0xff] }
 0x853   :  { %v2195_v53 = vmul.f32 %v2728_v17, %v2185_v10  ;;  %v2180_v18 = vadd.f32 -0.28449672, %v2178_v22 }
 0x855   :  { %v2197_v8 = vsub.f32 1.0, %v2195_v53  ;;  %v2182_v0 = vmul.f32 %v2180_v18, %v2167_v62 }
 0x857   :  { %v2199_v28 = vmul.f32 %v2197_v8, %v2131_v45  ;;  %v2184_v21 = vadd.f32 0.2548296, %v2182_v0 }
 0x859   :  { %v2203_v39 = vadd.f32 1.0, %v2199_v28  ;;  %v2186_v16 = vmul.f32 %v2184_v21, %v2167_v62 }
 0x85b   :  { %v2205_v26 = vmul.f32 %v2203_v39, %v2201_v9  ;;  %v2196_v37 = vmul.f32 %v2730_v7, %v2186_v16 }
 0x85d   :  { %v2240_v55 = vand.u32 4294901760, %v2205_v26  ;;  %v2198_v48 = vsub.f32 1.0, %v2196_v37 }
 0x85f   :  { %v2241_v5 = vsub.f32 %v2205_v26, %v2240_v55  ;;  %2354 = vmatmul.f32.vlgmr.msra.gmra.mxu1 %v2240_v55  ;;  %v2200_v50 = vmul.f32 %v2198_v48, %v2132_v49 }
 0x861   :  { %2412 = vmatmul.f32.vlgmr.msra.gmra.mxu2 %v2241_v5  ;;  %v2242_v56 = vand.u32 4294901760, %v2241_v5  ;;  %v2204_v35 = vadd.f32 1.0, %v2200_v50 }
 0x863   :  { %2456 = vmatmul.f32.vlgmr.msra.gmra.mxu3 %v2242_v56  ;;  %v2243_v58 = vsub.f32 %v2241_v5, %v2242_v56  ;;  %v2206_v20 = vmul.f32 %v2204_v35, %v2202_v51  ;;  %v2699_v51 = vld [vmem:[%s3773_s3 + $0x2a] ss:$0 sm:$0xff] }
 0x865   :  { %v2244_v6 = vand.u32 4294901760, %v2243_v58  ;;  %v2248_v30 = vand.u32 4294901760, %v2206_v20 }
 0x867   :  { %2245 = vmatmul.f32.vlgmr.msra.gmra.mxu0 %v2244_v6  ;;  %2358 = vmatmul.f32.gmra.mxu1 %v2248_v30  ;;  %v2249_v3 = vsub.f32 %v2206_v20, %v2248_v30  ;;  %v2700_v20 = vld [vmem:[%s3773_s3 + $0x2b] ss:$0 sm:$0xff]  ;;  %s2764_s3 = smov 128  }
 0x869   :  { %2417 = vmatmul.f32.gmra.mxu2 %v2249_v3  ;;  %v2250_v11 = vand.u32 4294901760, %v2249_v3 }
 0x86b   :  { %2462 = vmatmul.f32.gmra.mxu3 %v2250_v11  ;;  %v2251_v52 = vsub.f32 %v2249_v3, %v2250_v11 }
 0x86d   :  { %v2252_v32 = vand.u32 4294901760, %v2251_v52 }
 0x86f   :  { %2253 = vmatmul.f32.gmra.mxu0 %v2252_v32  ;;  %2572 = vmatmul.f32.vlgmr.msrb.gmra.mxu1 %v2240_v55 }
 0x877   :  { %2531 = vmatmul.f32.vlgmr.msrb.gmra.mxu0 %v2240_v55  ;;  %2576 = vmatmul.f32.gmra.mxu1 %v2248_v30 }
 0x87f   :  { %2535 = vmatmul.f32.gmra.mxu0 %v2248_v30 }
 0x8dc   :  { %v2355_v23 = vpop.f32.mrf.mxu1 }
 0x8e4   :  { %v2246_v4 = vpop.f32.mrf.mxu0  ;;  %v2359_v46 = vpop.f32.mrf.mxu1 }
 0x8e5   :  { %v2247_v12 = vadd.f32 %v2698_v60, %v2246_v4  ;;  %v2413_v40 = vpop.f32.mrf.mxu2 }
 0x8e6   :  { %v2457_v38 = vpop.f32.mrf.mxu3 }
 0x8e7   :  { %v2356_v29 = vadd.f32 %v2355_v23, %v2247_v12 }
 0x8e9   :  { %v2414_v13 = vadd.f32 %v2413_v40, %v2356_v29 }
 0x8eb   :  { %v2458_v41 = vadd.f32 %v2457_v38, %v2414_v13 }
 0x8ec   :  { %v2254_v59 = vpop.f32.mrf.mxu0  ;;  %v2573_v44 = vpop.f32.mrf.mxu1 }
 0x8ed   :  { %v2255_v54 = vadd.f32 %v2698_v60, %v2254_v59  ;;  %v2418_v43 = vpop.f32.mrf.mxu2 }
 0x8ee   :  { %v2463_v15 = vpop.f32.mrf.mxu3 }
 0x8ef   :  { %v2360_v63 = vadd.f32 %v2359_v46, %v2255_v54 }
 0x8f1   :  { %v2419_v1 = vadd.f32 %v2418_v43, %v2360_v63 }
 0x8f3   :  { %v2464_v33 = vadd.f32 %v2463_v15, %v2419_v1 }
 0x8f4   :  { %v2532_v14 = vpop.f32.mrf.mxu0  ;;  %v2577_v31 = vpop.f32.mrf.mxu1 }
 0x8f5   :  { %v2533_v19 = vadd.f32 %v2532_v14, %v2458_v41 }
 0x8f7   :  { %v2574_v62 = vadd.f32 %v2573_v44, %v2533_v19 }
 0x8f9   :  { %v2580_v24 = vadd.f32 %v2574_v62, %v3420_v36 }
 0x8fb   :  { %v2582_v47 = vsel %vm338_vm1, %v2580_v24, 0.0 }
 0x8fc   :  { %v2536_v34 = vpop.f32.mrf.mxu0  ;;  %2583 = vadd.xlane.f32.xlu0 %v2582_v47 }
 0x8fd   :  { %v2537_v61 = vadd.f32 %v2536_v34, %v2464_v33 }
 0x8ff   :  { %v2578_v57 = vadd.f32 %v2577_v31, %v2537_v61 }
 0x901   :  { %v2581_v42 = vadd.f32 %v2578_v57, %v3425_v2 }
 0x903   :  { %v2585_v10 = vsel %vm338_vm1, %v2581_v42, 0.0 }
 0x904   :  { %2586 = vadd.xlane.f32.xlu1 %v2585_v10 }
 0x96f   :  { %v2584_v27 = vpop.xlane.xlu0 %2583 }
 0x970   :  { %v2588_v17 = vmul.f32 %v2584_v27, %v2953_v25 }
 0x972   :  { %v2590_v22 = vsub.f32 %v2580_v24, %v2588_v17 }
 0x974   :  { %v2592_v53 = vmul.f32 %v2590_v22, %v2590_v22 }
 0x976   :  { %v2594_v36 = vsel %vm338_vm1, %v2592_v53, 0.0 }
 0x977   :  { %2595 = vadd.xlane.f32.xlu2 %v2594_v36  ;;  %v2587_v18 = vpop.xlane.xlu1 %2586 }
 0x978   :  { %v2589_v8 = vmul.f32 %v2587_v18, %v2953_v25 }
 0x97a   :  { %v2591_v45 = vsub.f32 %v2581_v42, %v2589_v8 }
 0x97c   :  { %v2593_v0 = vmul.f32 %v2591_v45, %v2591_v45 }
 0x97e   :  { %v2597_v28 = vsel %vm338_vm1, %v2593_v0, 0.0 }
 0x97f   :  { %2598 = vadd.xlane.f32.xlu0 %v2597_v28 }
 0x9ea   :  { %v2596_v2 = vpop.xlane.xlu2 %2595 }
 0x9eb   :  { %v2600_v21 = vmul.f32 %v2596_v2, %v2953_v25 }
 0x9ed   :  { %v2602_v9 = vadd.f32 1e-12, %v2600_v21 }
 0x9ef   :  { %2731 = vrsqrt.f32 %v2602_v9  ;;  %vm2610_vm12 = vweird.f32 %v2602_v9 }
 0x9f2   :  { %v2599_v39 = vpop.xlane.xlu0 %2598 }
 0x9f3   :  { %v2601_v16 = vmul.f32 %v2599_v39, %v2953_v25 }
 0x9f5   :  { %v2732_v7 = vpop.eup %2731  ;;  %v2603_v26 = vadd.f32 1e-12, %v2601_v16 }
 0x9f6   :  { %v2605_v37 = vmul.f32 %v2732_v7, %v2602_v9  ;;  %vm2611_vm11 = vweird.f32 %v2732_v7 }
 0x9f7   :  { %2733 = vrsqrt.f32 %v2603_v26  ;;  %vm2612_vm13 = vmor %vm2610_vm12, %vm2611_vm11  ;;  %vm2620_vm15 = vweird.f32 %v2603_v26 }
 0x9f8   :  { %v2606_v55 = vmul.f32 %v2732_v7, %v2605_v37 }
 0x9fa   :  { %v2607_v48 = vmul.f32 0.5, %v2606_v55 }
 0x9fc   :  { %v2608_v5 = vsub.f32 1.5, %v2607_v48 }
 0x9fd   :  { %v2734_v49 = vpop.eup %2733 }
 0x9fe   :  { %v2609_v50 = vmul.f32 %v2732_v7, %v2608_v5  ;;  %v2615_v56 = vmul.f32 %v2734_v49, %v2603_v26  ;;  %vm2621_vm14 = vweird.f32 %v2734_v49 }
 0x9ff   :  { %vm2622_vm0 = vmor %vm2620_vm15, %vm2621_vm14 }
 0xa00   :  { %v2613_v35 = vsel %vm2612_vm13, %v2732_v7, %v2609_v50  ;;  %v2616_v58 = vmul.f32 %v2734_v49, %v2615_v56 }
 0xa01   :  { %v2624_v25 = vmul.f32 %v2613_v35, %v2590_v22 }
 0xa02   :  { %v2617_v6 = vmul.f32 0.5, %v2616_v58 }
 0xa03   :  { %v2627_v30 = vmul.f32 %v2699_v51, %v2624_v25 }
 0xa04   :  { %v2618_v3 = vsub.f32 1.5, %v2617_v6 }
 0xa05   :  { %v2630_v11 = vadd.f32 %v2700_v20, %v2627_v30 }
 0xa06   :  { %v2619_v52 = vmul.f32 %v2734_v49, %v2618_v3 }
 0xa07   :  { %2632 = vst.msk [vmem:[#allocation2] sm:$0xff] %vm338_vm1, %v2630_v11 }
 0xa08   :  { %v2623_v32 = vsel %vm2622_vm0, %v2734_v49, %v2619_v52 }
 0xa09   :  { %v2625_v23 = vmul.f32 %v2623_v32, %v2591_v45 }
 0xa0b   :  { %v2628_v60 = vmul.f32 %v2699_v51, %v2625_v23 }
 0xa0d   :  { %v2631_v4 = vadd.f32 %v2700_v20, %v2628_v60 }
 0xa0f   :  { %2633 = vst.msk [vmem:[#allocation2 + $0x8] sm:$0xff] %vm338_vm1, %v2631_v4 }
 0xa10   :  { %2646 = dma.vmem_to_hbm [thread:$0]  %s2639_s14, 256, %s2641_s16, [#allocation3], %s2764_s3, %s2764_s3, %s2765_s4  }
 0xa11   :  { %2759 = dma.done.wait [#allocation3], 256  }
 0xa12   :  { %2760 = vsyncadd [#allocation3], 4294967040 }
 0xa13   :  { %2651 = vsyncpa [#allocation3], 1 }

</bundles_post_ra>
